<compile_context>
chip_gen: v7x
topology: tpu7x:2x2x1
jax: 0.10.0
libtpu: 0.0.40
codegen_flags: <defaults>
</compile_context>

<pallas_src>
import math
import functools

import jax
import jax.numpy as jnp
from jax import lax
from jax.experimental import pallas as pl
from jax.experimental.pallas import tpu as pltpu


_SQRT_2_OVER_PI = math.sqrt(2.0 / math.pi)


def _new_gelu(x):
    # Matches NewGELUActivation (tanh approximation), computed in f32.
    return 0.5 * x * (1.0 + jnp.tanh(_SQRT_2_OVER_PI * (x + 0.044715 * x * x * x)))


def _encoder_stack_kernel(
    x_ref,
    ln1g_ref, ln1b_ref,
    wqkv_ref, bqkv_ref,
    wo_ref, bo_ref,
    ln2g_ref, ln2b_ref,
    w1_ref, b1_ref,
    w2_ref, b2_ref,
    o_ref,
    ctx_ref,
    *, num_heads, head_size,
):
    """One (batch-block, layer) grid step of the fused encoder stack.

    The output block index is constant along the layer axis, so o_ref is the
    resident VMEM carry for this batch block's activations.  ctx_ref is an
    (Bt, S, D) f32 scratch collecting per-head attention contexts so the
    output projection can be a single full-width matmul.
    """
    layer = pl.program_id(1)
    eps = 1e-5
    hidden = num_heads * head_size
    scale = 1.0 / math.sqrt(head_size)

    @pl.when(layer == 0)
    def _():
        o_ref[...] = x_ref[...]

    Bt, S, D = o_ref.shape
    M = Bt * S
    x = o_ref[...].reshape(M, D)                              # (Bt*S, D) f32 residual

    # ---- LayerNorm 1 (f32) ----
    mu = jnp.mean(x, axis=-1, keepdims=True)
    var = jnp.mean(jnp.square(x - mu), axis=-1, keepdims=True)
    xn = (x - mu) * lax.rsqrt(var + eps) * ln1g_ref[0] + ln1b_ref[0]

    # ---- Fused QKV projection: one (Bt*S, D) x (D, 3D) bf16 MXU matmul ----
    xn_bf = xn.astype(jnp.bfloat16)                           # single cast, reused
    qkv = jnp.dot(xn_bf, wqkv_ref[0],
                  preferred_element_type=jnp.float32) + bqkv_ref[0]      # (M, 3D)
    qkv3 = qkv.reshape(Bt, S, 3 * hidden)
    q = qkv3[:, :, 0:hidden].astype(jnp.bfloat16)
    k = qkv3[:, :, hidden:2 * hidden].astype(jnp.bfloat16)
    v = qkv3[:, :, 2 * hidden:3 * hidden].astype(jnp.bfloat16)

    # ---- Multi-head self-attention ----
    # Static loop over heads; the (S,S) score/context matmuls are batched over
    # the Bt samples.  Each head's context is stored into ctx_ref at its lane
    # offset, so no per-head output projection / accumulator chain is needed.
    for h in range(num_heads):
        sl = slice(h * head_size, (h + 1) * head_size)
        qh, kh, vh = q[:, :, sl], k[:, :, sl], v[:, :, sl]     # (Bt, S, hd) bf16
        s = jnp.einsum('bqd,bkd->bqk', qh, kh,
                       preferred_element_type=jnp.float32) * scale        # (Bt,S,S)
        s = s - jnp.max(s, axis=-1, keepdims=True)
        p = jnp.exp(s)
        p = p * pl.reciprocal(jnp.sum(p, axis=-1, keepdims=True), approx=True)
        ctx = jnp.einsum('bqk,bkd->bqd', p.astype(jnp.bfloat16), vh,
                         preferred_element_type=jnp.float32)              # (Bt,S,hd)
        ctx_ref[:, :, sl] = ctx

    # Single full-width output projection: (Bt*S, D) x (D, D), K = D.
    ctx_flat = ctx_ref[...].reshape(M, hidden).astype(jnp.bfloat16)       # one cast
    attn = jnp.dot(ctx_flat, wo_ref[0],
                   preferred_element_type=jnp.float32) + bo_ref[0]        # (M, D)
    x = x + attn                                                          # residual 1

    # ---- LayerNorm 2 (f32) ----
    mu2 = jnp.mean(x, axis=-1, keepdims=True)
    var2 = jnp.mean(jnp.square(x - mu2), axis=-1, keepdims=True)
    xn2 = (x - mu2) * lax.rsqrt(var2 + eps) * ln2g_ref[0] + ln2b_ref[0]

    # ---- MLP (bf16 matmuls, f32 GELU) ----
    h1 = jnp.dot(xn2.astype(jnp.bfloat16), w1_ref[0],
                 preferred_element_type=jnp.float32) + b1_ref[0]          # (M, I)
    h2 = jnp.dot(_new_gelu(h1).astype(jnp.bfloat16), w2_ref[0],
                 preferred_element_type=jnp.float32) + b2_ref[0]          # (M, D)

    o_ref[...] = (x + h2).reshape(Bt, S, D).astype(o_ref.dtype)           # residual 2


_PARAM_ORDER = ("ln1g", "ln1b", "wqkv", "bqkv", "wo", "bo",
                "ln2g", "ln2b", "w1", "b1", "w2", "b2")


def _pick_vmem_limit():
    """Scoped-VMEM budget per generation (defaults are only 16-32 MiB)."""
    try:
        cap = int(pltpu.get_tpu_info().vmem_capacity_bytes)
    except Exception:
        cap = 64 << 20        # conservative fallback (safe on v5e/v6e/v7x)
    return min(int(cap * 0.85), 100 << 20)


def vit_encoder_forward(x, params, *, num_heads, block_batch=None,
                        vmem_limit_bytes=None):
    """VITEncoder forward (output_attentions=False path; dropout = identity).

    x: (B, S, D) float32 token embeddings. Returns (B, S, D) float32.
    NOTE: weights use (in, out) layout; PyTorch nn.Linear checkpoints must be
    transposed before loading.
    """
    B, S, D = x.shape
    L = params["wqkv"].shape[0]
    assert D % num_heads == 0
    head_size = D // num_heads

    if block_batch is None:
        # Largest batch block <= 4 that divides B while keeping >= 2 batch
        # blocks when B > 1 (so both v7x TensorCores get work).
        cap = max(1, min(4, B // 2)) if B > 1 else 1
        block_batch = max(d for d in range(1, cap + 1) if B % d == 0)
    Bt = block_batch
    assert B % Bt == 0, (B, Bt)

    if vmem_limit_bytes is None:
        vmem_limit_bytes = _pick_vmem_limit()

    plist = [params[n] for n in _PARAM_ORDER]

    def _param_spec(p):
        nd = p.ndim
        return pl.BlockSpec((1,) + p.shape[1:],
                            lambda b, l, _nd=nd: (l,) + (0,) * (_nd - 1))

    # NOTE: the x input's block index only changes on the batch axis; its
    # second pipeline buffer is wasted VMEM but small, so left at the default.
    in_specs = [pl.BlockSpec((Bt, S, D), lambda b, l: (b, 0, 0))]
    in_specs += [_param_spec(p) for p in plist]

    kernel = functools.partial(_encoder_stack_kernel,
                               num_heads=num_heads, head_size=head_size)
    return pl.pallas_call(
        kernel,
        out_shape=jax.ShapeDtypeStruct((B, S, D), jnp.float32),
        grid=(B // Bt, L),
        in_specs=in_specs,
        out_specs=pl.BlockSpec((Bt, S, D), lambda b, l: (b, 0, 0)),
        scratch_shapes=[pltpu.VMEM((Bt, S, D), jnp.float32)],
        compiler_params=pltpu.CompilerParams(
            dimension_semantics=("parallel", "arbitrary"),
            vmem_limit_bytes=vmem_limit_bytes),
    )(x, *plist)


def init_params(key, *, num_layers, num_heads, hidden_size, intermediate_size):
    """Per-layer parameters stacked along a leading L axis.

    MXU weights are stored in bf16 (f32 accumulation in-kernel); LayerNorm
    parameters and biases stay f32.  Layout is (in, out).
    """
    D, I, L = hidden_size, intermediate_size, num_layers
    keys = jax.random.split(key, 4)

    def nrm(k, shape, scale=0.02):
        return scale * jax.random.normal(k, shape, dtype=jnp.float32)

    wqkv = nrm(keys[0], (L, D, 3 * D)).astype(jnp.bfloat16)
    wo = nrm(keys[1], (L, D, D)).astype(jnp.bfloat16)
    w1 = nrm(keys[2], (L, D, I)).astype(jnp.bfloat16)
    w2 = nrm(keys[3], (L, I, D)).astype(jnp.bfloat16)
    return dict(
        ln1g=jnp.ones((L, 1, D), jnp.float32),
        ln1b=jnp.zeros((L, 1, D), jnp.float32),
        wqkv=wqkv,
        bqkv=jnp.zeros((L, 1, 3 * D), jnp.float32),
        wo=wo,
        bo=jnp.zeros((L, 1, D), jnp.float32),
        ln2g=jnp.ones((L, 1, D), jnp.float32),
        ln2b=jnp.zeros((L, 1, D), jnp.float32),
        w1=w1,
        b1=jnp.zeros((L, 1, I), jnp.float32),
        w2=w2,
        b2=jnp.zeros((L, 1, D), jnp.float32),
    )


def vit_encoder_reference(x, params, *, num_heads):
    """Pure-JAX reference (f32 math on the same bf16-stored weights)."""
    B, S, D = x.shape
    L = params["wqkv"].shape[0]
    hd = D // num_heads
    scale = 1.0 / math.sqrt(hd)

    def ln(v, g, b):
        mu = v.mean(-1, keepdims=True)
        var = ((v - mu) ** 2).mean(-1, keepdims=True)
        return (v - mu) / jnp.sqrt(var + 1e-5) * g + b

    for l in range(L):
        xn = ln(x, params["ln1g"][l, 0], params["ln1b"][l, 0])
        qkv = xn @ params["wqkv"][l].astype(jnp.float32) + params["bqkv"][l, 0]
        q, k, v = jnp.split(qkv, 3, axis=-1)
        q = q.reshape(B, S, num_heads, hd).transpose(0, 2, 1, 3)
        k = k.reshape(B, S, num_heads, hd).transpose(0, 2, 1, 3)
        v = v.reshape(B, S, num_heads, hd).transpose(0, 2, 1, 3)
        s = jnp.einsum('bhqd,bhkd->bhqk', q, k) * scale
        p = jax.nn.softmax(s, axis=-1)
        ctx = jnp.einsum('bhqk,bhkd->bhqd', p, v)
        ctx = ctx.transpose(0, 2, 1, 3).reshape(B, S, D)
        attn = ctx @ params["wo"][l].astype(jnp.float32) + params["bo"][l, 0]
        x = x + attn
        xn2 = ln(x, params["ln2g"][l, 0], params["ln2b"][l, 0])
        h1 = xn2 @ params["w1"][l].astype(jnp.float32) + params["b1"][l, 0]
        h2 = _new_gelu(h1) @ params["w2"][l].astype(jnp.float32) + params["b2"][l, 0]
        x = x + h2
    return x


if __name__ == "__main__":
    num_layers = 2
    num_heads = 4
    hidden_size = 32
    intermediate_size = 64
    batch = 4
    seq = 16

    key = jax.random.PRNGKey(0)
    kx, kp = jax.random.split(key)
    x = jax.random.normal(kx, (batch, seq, hidden_size), dtype=jnp.float32)
    params = init_params(kp, num_layers=num_layers, num_heads=num_heads,
                         hidden_size=hidden_size,
                         intermediate_size=intermediate_size)

    fwd = jax.jit(functools.partial(vit_encoder_forward, num_heads=num_heads,
                                    block_batch=2))
    out = fwd(x, params)
    jax.block_until_ready(out)

    assert out.shape == (batch, seq, hidden_size), out.shape
    assert bool(jnp.all(jnp.isfinite(out)))

    ref = vit_encoder_reference(x, params, num_heads=num_heads)
    max_err = float(jnp.max(jnp.abs(out - ref)))
    assert max_err < 5e-2, f"max abs error vs reference: {max_err}"

    print("KERNEL_OK")
</pallas_src>

<mosaic_0001>
module attributes {stable_mosaic.version = 11 : i64} {
  func.func @_encoder_stack_kernel(%arg0: i32, %arg1: i32, %arg2: memref<2x16x32xf32, #tpu.memory_space<vmem>>, %arg3: memref<1x1x32xf32, #tpu.memory_space<vmem>>, %arg4: memref<1x1x32xf32, #tpu.memory_space<vmem>>, %arg5: memref<1x32x96xbf16, #tpu.memory_space<vmem>>, %arg6: memref<1x1x96xf32, #tpu.memory_space<vmem>>, %arg7: memref<1x32x32xbf16, #tpu.memory_space<vmem>>, %arg8: memref<1x1x32xf32, #tpu.memory_space<vmem>>, %arg9: memref<1x1x32xf32, #tpu.memory_space<vmem>>, %arg10: memref<1x1x32xf32, #tpu.memory_space<vmem>>, %arg11: memref<1x32x64xbf16, #tpu.memory_space<vmem>>, %arg12: memref<1x1x64xf32, #tpu.memory_space<vmem>>, %arg13: memref<1x64x32xbf16, #tpu.memory_space<vmem>>, %arg14: memref<1x1x32xf32, #tpu.memory_space<vmem>>, %arg15: memref<2x16x32xf32, #tpu.memory_space<vmem>>, %arg16: memref<2x16x32xf32, #tpu.memory_space<vmem>>) attributes {dimension_semantics = [#tpu.dimension_semantics<parallel>, #tpu.dimension_semantics<arbitrary>], iteration_bounds = array<i64: 2, 2>, scalar_prefetch = 0 : i64, scratch_operands = 1 : i64, tpu.core_type = #tpu.core_type<tc>, window_params = [{transform_indices = @transform_0, window_bounds = array<i64: 2, 16, 32>}, {transform_indices = @transform_1, window_bounds = array<i64: 1, 1, 32>}, {transform_indices = @transform_2, window_bounds = array<i64: 1, 1, 32>}, {transform_indices = @transform_3, window_bounds = array<i64: 1, 32, 96>}, {transform_indices = @transform_4, window_bounds = array<i64: 1, 1, 96>}, {transform_indices = @transform_5, window_bounds = array<i64: 1, 32, 32>}, {transform_indices = @transform_6, window_bounds = array<i64: 1, 1, 32>}, {transform_indices = @transform_7, window_bounds = array<i64: 1, 1, 32>}, {transform_indices = @transform_8, window_bounds = array<i64: 1, 1, 32>}, {transform_indices = @transform_9, window_bounds = array<i64: 1, 32, 64>}, {transform_indices = @transform_10, window_bounds = array<i64: 1, 1, 64>}, {transform_indices = @transform_11, window_bounds = array<i64: 1, 64, 32>}, {transform_indices = @transform_12, window_bounds = array<i64: 1, 1, 32>}, {transform_indices = @transform_13, window_bounds = array<i64: 2, 16, 32>}]} {
    %c0_i32 = arith.constant 0 : i32
    %0 = arith.cmpi eq, %arg1, %c0_i32 : i32
    %1 = arith.extui %0 : i1 to i32
    %c0_i32_0 = arith.constant 0 : i32
    %2 = arith.cmpi ne, %1, %c0_i32_0 : i32
    scf.if %2 {
      %c0_91 = arith.constant 0 : index
      %c0_92 = arith.constant 0 : index
      %c0_93 = arith.constant 0 : index
      %191 = vector.load %arg2[%c0_91, %c0_92, %c0_93] : memref<2x16x32xf32, #tpu.memory_space<vmem>>, vector<2x16x32xf32>
      %c0_94 = arith.constant 0 : index
      %c0_95 = arith.constant 0 : index
      %c0_96 = arith.constant 0 : index
      %192 = vector.load %arg15[%c0_94, %c0_95, %c0_96] : memref<2x16x32xf32, #tpu.memory_space<vmem>>, vector<2x16x32xf32>
      tpu.vector_store %arg15[%c0_94, %c0_95, %c0_96], %191 {strides = array<i32>} : memref<2x16x32xf32, #tpu.memory_space<vmem>>, vector<2x16x32xf32>,
    } else {
    }
    %c0 = arith.constant 0 : index
    %c0_1 = arith.constant 0 : index
    %c0_2 = arith.constant 0 : index
    %3 = vector.load %arg15[%c0, %c0_1, %c0_2] : memref<2x16x32xf32, #tpu.memory_space<vmem>>, vector<2x16x32xf32>
    %4 = vector.shape_cast %3 : vector<2x16x32xf32> to vector<32x32xf32>
    %cst = arith.constant dense<0.000000e+00> : vector<32xf32>
    %5 = vector.multi_reduction <add>, %4, %cst [1] : vector<32x32xf32> to vector<32xf32>
    %6 = vector.shape_cast %5 : vector<32xf32> to vector<32x1xf32>
    %cst_3 = arith.constant 3.200000e+01 : f32
    %7 = vector.broadcast %cst_3 : f32 to vector<32x1xf32>
    %8 = arith.divf %6, %7 : vector<32x1xf32>
    %9 = vector.broadcast %8 : vector<32x1xf32> to vector<32x32xf32>
    %10 = arith.subf %4, %9 : vector<32x32xf32>
    %11 = arith.mulf %10, %10 : vector<32x32xf32>
    %cst_4 = arith.constant dense<0.000000e+00> : vector<32xf32>
    %12 = vector.multi_reduction <add>, %11, %cst_4 [1] : vector<32x32xf32> to vector<32xf32>
    %13 = vector.shape_cast %12 : vector<32xf32> to vector<32x1xf32>
    %cst_5 = arith.constant 3.200000e+01 : f32
    %14 = vector.broadcast %cst_5 : f32 to vector<32x1xf32>
    %15 = arith.divf %13, %14 : vector<32x1xf32>
    %16 = vector.broadcast %8 : vector<32x1xf32> to vector<32x32xf32>
    %17 = arith.subf %4, %16 : vector<32x32xf32>
    %cst_6 = arith.constant 9.99999974E-6 : f32
    %18 = vector.broadcast %cst_6 : f32 to vector<32x1xf32>
    %19 = arith.addf %15, %18 : vector<32x1xf32>
    %20 = math.rsqrt %19 : vector<32x1xf32>
    %21 = vector.broadcast %20 : vector<32x1xf32> to vector<32x32xf32>
    %22 = arith.mulf %17, %21 : vector<32x32xf32>
    %c0_7 = arith.constant 0 : index
    %c0_8 = arith.constant 0 : index
    %c0_9 = arith.constant 0 : index
    %23 = vector.load %arg3[%c0_7, %c0_8, %c0_9] : memref<1x1x32xf32, #tpu.memory_space<vmem>>, vector<1x1x32xf32>
    %24 = vector.shape_cast %23 : vector<1x1x32xf32> to vector<1x32xf32>
    %25 = vector.broadcast %24 : vector<1x32xf32> to vector<32x32xf32>
    %26 = arith.mulf %22, %25 : vector<32x32xf32>
    %c0_10 = arith.constant 0 : index
    %c0_11 = arith.constant 0 : index
    %c0_12 = arith.constant 0 : index
    %27 = vector.load %arg4[%c0_10, %c0_11, %c0_12] : memref<1x1x32xf32, #tpu.memory_space<vmem>>, vector<1x1x32xf32>
    %28 = vector.shape_cast %27 : vector<1x1x32xf32> to vector<1x32xf32>
    %29 = vector.broadcast %28 : vector<1x32xf32> to vector<32x32xf32>
    %30 = arith.addf %26, %29 : vector<32x32xf32>
    %31 = arith.truncf %30 : vector<32x32xf32> to vector<32x32xbf16>
    %c0_13 = arith.constant 0 : index
    %c0_14 = arith.constant 0 : index
    %c0_15 = arith.constant 0 : index
    %32 = vector.load %arg5[%c0_13, %c0_14, %c0_15] : memref<1x32x96xbf16, #tpu.memory_space<vmem>>, vector<1x32x96xbf16>
    %33 = vector.shape_cast %32 : vector<1x32x96xbf16> to vector<32x96xbf16>
    %cst_16 = arith.constant dense<0.000000e+00> : vector<32x96xf32>
    %34 = tpu.matmul %31, %33, %cst_16 {dimension_numbers = #tpu.dot_dimension_numbers<[1], [0], [0], [1], [0, 0, 1, 1], [], []>} : vector<32x32xbf16>, vector<32x96xbf16>, vector<32x96xf32> -> vector<32x96xf32>
    %c0_17 = arith.constant 0 : index
    %c0_18 = arith.constant 0 : index
    %c0_19 = arith.constant 0 : index
    %35 = vector.load %arg6[%c0_17, %c0_18, %c0_19] : memref<1x1x96xf32, #tpu.memory_space<vmem>>, vector<1x1x96xf32>
    %36 = vector.shape_cast %35 : vector<1x1x96xf32> to vector<1x96xf32>
    %37 = vector.broadcast %36 : vector<1x96xf32> to vector<32x96xf32>
    %38 = arith.addf %34, %37 : vector<32x96xf32>
    %39 = vector.shape_cast %38 : vector<32x96xf32> to vector<2x16x96xf32>
    %40 = vector.extract_strided_slice %39 {offsets = [0, 0, 0], sizes = [2, 16, 32], strides = [1, 1, 1]} : vector<2x16x96xf32> to vector<2x16x32xf32>
    %41 = arith.truncf %40 : vector<2x16x32xf32> to vector<2x16x32xbf16>
    %42 = vector.extract_strided_slice %39 {offsets = [0, 0, 32], sizes = [2, 16, 32], strides = [1, 1, 1]} : vector<2x16x96xf32> to vector<2x16x32xf32>
    %43 = arith.truncf %42 : vector<2x16x32xf32> to vector<2x16x32xbf16>
    %44 = vector.extract_strided_slice %39 {offsets = [0, 0, 64], sizes = [2, 16, 32], strides = [1, 1, 1]} : vector<2x16x96xf32> to vector<2x16x32xf32>
    %45 = arith.truncf %44 : vector<2x16x32xf32> to vector<2x16x32xbf16>
    %46 = vector.extract_strided_slice %41 {offsets = [0, 0, 0], sizes = [2, 16, 8], strides = [1, 1, 1]} : vector<2x16x32xbf16> to vector<2x16x8xbf16>
    %47 = vector.extract_strided_slice %43 {offsets = [0, 0, 0], sizes = [2, 16, 8], strides = [1, 1, 1]} : vector<2x16x32xbf16> to vector<2x16x8xbf16>
    %48 = vector.extract_strided_slice %45 {offsets = [0, 0, 0], sizes = [2, 16, 8], strides = [1, 1, 1]} : vector<2x16x32xbf16> to vector<2x16x8xbf16>
    "tpu.trace_start"() <{level = 10 : i32, message = "bqd,bkd->bqk"}> : () -> ()
    %cst_20 = arith.constant dense<0.000000e+00> : vector<2x16x16xf32>
    %49 = tpu.matmul %46, %47, %cst_20 {dimension_numbers = #tpu.dot_dimension_numbers<[2], [2], [1], [1], [0, 0, 0, 1, 1, 1], [0], [0]>} : vector<2x16x8xbf16>, vector<2x16x8xbf16>, vector<2x16x16xf32> -> vector<2x16x16xf32>
    "tpu.trace_stop"() : () -> ()
    %cst_21 = arith.constant 0.353553385 : f32
    %50 = vector.broadcast %cst_21 : f32 to vector<2x16x16xf32>
    %51 = arith.mulf %49, %50 : vector<2x16x16xf32>
    %cst_22 = arith.constant dense<0xFF800000> : vector<2x16xf32>
    %52 = vector.multi_reduction <maximumf>, %51, %cst_22 [2] : vector<2x16x16xf32> to vector<2x16xf32>
    %53 = vector.shape_cast %52 : vector<2x16xf32> to vector<2x16x1xf32>
    %54 = vector.broadcast %53 : vector<2x16x1xf32> to vector<2x16x16xf32>
    %55 = arith.subf %51, %54 : vector<2x16x16xf32>
    %56 = math.exp %55 : vector<2x16x16xf32>
    %cst_23 = arith.constant dense<0.000000e+00> : vector<2x16xf32>
    %57 = vector.multi_reduction <add>, %56, %cst_23 [2] : vector<2x16x16xf32> to vector<2x16xf32>
    %58 = vector.shape_cast %57 : vector<2x16xf32> to vector<2x16x1xf32>
    %59 = tpu.reciprocal %58 {approx = true} : vector<2x16x1xf32> -> vector<2x16x1xf32>
    %60 = vector.broadcast %59 : vector<2x16x1xf32> to vector<2x16x16xf32>
    %61 = arith.mulf %56, %60 : vector<2x16x16xf32>
    %62 = arith.truncf %61 : vector<2x16x16xf32> to vector<2x16x16xbf16>
    "tpu.trace_start"() <{level = 10 : i32, message = "bqk,bkd->bqd"}> : () -> ()
    %cst_24 = arith.constant dense<0.000000e+00> : vector<2x16x8xf32>
    %63 = tpu.matmul %62, %48, %cst_24 {dimension_numbers = #tpu.dot_dimension_numbers<[2], [1], [1], [2], [0, 0, 0, 1, 1, 2], [0], [0]>} : vector<2x16x16xbf16>, vector<2x16x8xbf16>, vector<2x16x8xf32> -> vector<2x16x8xf32>
    "tpu.trace_stop"() : () -> ()
    %c0_25 = arith.constant 0 : index
    %c0_26 = arith.constant 0 : index
    %c0_27 = arith.constant 0 : index
    %64 = vector.load %arg16[%c0_25, %c0_26, %c0_27] : memref<2x16x32xf32, #tpu.memory_space<vmem>>, vector<2x16x8xf32>
    tpu.vector_store %arg16[%c0_25, %c0_26, %c0_27], %63 {strides = array<i32>} : memref<2x16x32xf32, #tpu.memory_space<vmem>>, vector<2x16x8xf32>,
    %65 = vector.extract_strided_slice %41 {offsets = [0, 0, 8], sizes = [2, 16, 8], strides = [1, 1, 1]} : vector<2x16x32xbf16> to vector<2x16x8xbf16>
    %66 = vector.extract_strided_slice %43 {offsets = [0, 0, 8], sizes = [2, 16, 8], strides = [1, 1, 1]} : vector<2x16x32xbf16> to vector<2x16x8xbf16>
    %67 = vector.extract_strided_slice %45 {offsets = [0, 0, 8], sizes = [2, 16, 8], strides = [1, 1, 1]} : vector<2x16x32xbf16> to vector<2x16x8xbf16>
    "tpu.trace_start"() <{level = 10 : i32, message = "bqd,bkd->bqk"}> : () -> ()
    %cst_28 = arith.constant dense<0.000000e+00> : vector<2x16x16xf32>
    %68 = tpu.matmul %65, %66, %cst_28 {dimension_numbers = #tpu.dot_dimension_numbers<[2], [2], [1], [1], [0, 0, 0, 1, 1, 1], [0], [0]>} : vector<2x16x8xbf16>, vector<2x16x8xbf16>, vector<2x16x16xf32> -> vector<2x16x16xf32>
    "tpu.trace_stop"() : () -> ()
    %cst_29 = arith.constant 0.353553385 : f32
    %69 = vector.broadcast %cst_29 : f32 to vector<2x16x16xf32>
    %70 = arith.mulf %68, %69 : vector<2x16x16xf32>
    %cst_30 = arith.constant dense<0xFF800000> : vector<2x16xf32>
    %71 = vector.multi_reduction <maximumf>, %70, %cst_30 [2] : vector<2x16x16xf32> to vector<2x16xf32>
    %72 = vector.shape_cast %71 : vector<2x16xf32> to vector<2x16x1xf32>
    %73 = vector.broadcast %72 : vector<2x16x1xf32> to vector<2x16x16xf32>
    %74 = arith.subf %70, %73 : vector<2x16x16xf32>
    %75 = math.exp %74 : vector<2x16x16xf32>
    %cst_31 = arith.constant dense<0.000000e+00> : vector<2x16xf32>
    %76 = vector.multi_reduction <add>, %75, %cst_31 [2] : vector<2x16x16xf32> to vector<2x16xf32>
    %77 = vector.shape_cast %76 : vector<2x16xf32> to vector<2x16x1xf32>
    %78 = tpu.reciprocal %77 {approx = true} : vector<2x16x1xf32> -> vector<2x16x1xf32>
    %79 = vector.broadcast %78 : vector<2x16x1xf32> to vector<2x16x16xf32>
    %80 = arith.mulf %75, %79 : vector<2x16x16xf32>
    %81 = arith.truncf %80 : vector<2x16x16xf32> to vector<2x16x16xbf16>
    "tpu.trace_start"() <{level = 10 : i32, message = "bqk,bkd->bqd"}> : () -> ()
    %cst_32 = arith.constant dense<0.000000e+00> : vector<2x16x8xf32>
    %82 = tpu.matmul %81, %67, %cst_32 {dimension_numbers = #tpu.dot_dimension_numbers<[2], [1], [1], [2], [0, 0, 0, 1, 1, 2], [0], [0]>} : vector<2x16x16xbf16>, vector<2x16x8xbf16>, vector<2x16x8xf32> -> vector<2x16x8xf32>
    "tpu.trace_stop"() : () -> ()
    %c0_33 = arith.constant 0 : index
    %c0_34 = arith.constant 0 : index
    %c8 = arith.constant 8 : index
    %83 = vector.load %arg16[%c0_33, %c0_34, %c8] : memref<2x16x32xf32, #tpu.memory_space<vmem>>, vector<2x16x8xf32>
    tpu.vector_store %arg16[%c0_33, %c0_34, %c8], %82 {strides = array<i32>} : memref<2x16x32xf32, #tpu.memory_space<vmem>>, vector<2x16x8xf32>,
    %84 = vector.extract_strided_slice %41 {offsets = [0, 0, 16], sizes = [2, 16, 8], strides = [1, 1, 1]} : vector<2x16x32xbf16> to vector<2x16x8xbf16>
    %85 = vector.extract_strided_slice %43 {offsets = [0, 0, 16], sizes = [2, 16, 8], strides = [1, 1, 1]} : vector<2x16x32xbf16> to vector<2x16x8xbf16>
    %86 = vector.extract_strided_slice %45 {offsets = [0, 0, 16], sizes = [2, 16, 8], strides = [1, 1, 1]} : vector<2x16x32xbf16> to vector<2x16x8xbf16>
    "tpu.trace_start"() <{level = 10 : i32, message = "bqd,bkd->bqk"}> : () -> ()
    %cst_35 = arith.constant dense<0.000000e+00> : vector<2x16x16xf32>
    %87 = tpu.matmul %84, %85, %cst_35 {dimension_numbers = #tpu.dot_dimension_numbers<[2], [2], [1], [1], [0, 0, 0, 1, 1, 1], [0], [0]>} : vector<2x16x8xbf16>, vector<2x16x8xbf16>, vector<2x16x16xf32> -> vector<2x16x16xf32>
    "tpu.trace_stop"() : () -> ()
    %cst_36 = arith.constant 0.353553385 : f32
    %88 = vector.broadcast %cst_36 : f32 to vector<2x16x16xf32>
    %89 = arith.mulf %87, %88 : vector<2x16x16xf32>
    %cst_37 = arith.constant dense<0xFF800000> : vector<2x16xf32>
    %90 = vector.multi_reduction <maximumf>, %89, %cst_37 [2] : vector<2x16x16xf32> to vector<2x16xf32>
    %91 = vector.shape_cast %90 : vector<2x16xf32> to vector<2x16x1xf32>
    %92 = vector.broadcast %91 : vector<2x16x1xf32> to vector<2x16x16xf32>
    %93 = arith.subf %89, %92 : vector<2x16x16xf32>
    %94 = math.exp %93 : vector<2x16x16xf32>
    %cst_38 = arith.constant dense<0.000000e+00> : vector<2x16xf32>
    %95 = vector.multi_reduction <add>, %94, %cst_38 [2] : vector<2x16x16xf32> to vector<2x16xf32>
    %96 = vector.shape_cast %95 : vector<2x16xf32> to vector<2x16x1xf32>
    %97 = tpu.reciprocal %96 {approx = true} : vector<2x16x1xf32> -> vector<2x16x1xf32>
    %98 = vector.broadcast %97 : vector<2x16x1xf32> to vector<2x16x16xf32>
    %99 = arith.mulf %94, %98 : vector<2x16x16xf32>
    %100 = arith.truncf %99 : vector<2x16x16xf32> to vector<2x16x16xbf16>
    "tpu.trace_start"() <{level = 10 : i32, message = "bqk,bkd->bqd"}> : () -> ()
    %cst_39 = arith.constant dense<0.000000e+00> : vector<2x16x8xf32>
    %101 = tpu.matmul %100, %86, %cst_39 {dimension_numbers = #tpu.dot_dimension_numbers<[2], [1], [1], [2], [0, 0, 0, 1, 1, 2], [0], [0]>} : vector<2x16x16xbf16>, vector<2x16x8xbf16>, vector<2x16x8xf32> -> vector<2x16x8xf32>
    "tpu.trace_stop"() : () -> ()
    %c0_40 = arith.constant 0 : index
    %c0_41 = arith.constant 0 : index
    %c16 = arith.constant 16 : index
    %102 = vector.load %arg16[%c0_40, %c0_41, %c16] : memref<2x16x32xf32, #tpu.memory_space<vmem>>, vector<2x16x8xf32>
    tpu.vector_store %arg16[%c0_40, %c0_41, %c16], %101 {strides = array<i32>} : memref<2x16x32xf32, #tpu.memory_space<vmem>>, vector<2x16x8xf32>,
    %103 = vector.extract_strided_slice %41 {offsets = [0, 0, 24], sizes = [2, 16, 8], strides = [1, 1, 1]} : vector<2x16x32xbf16> to vector<2x16x8xbf16>
    %104 = vector.extract_strided_slice %43 {offsets = [0, 0, 24], sizes = [2, 16, 8], strides = [1, 1, 1]} : vector<2x16x32xbf16> to vector<2x16x8xbf16>
    %105 = vector.extract_strided_slice %45 {offsets = [0, 0, 24], sizes = [2, 16, 8], strides = [1, 1, 1]} : vector<2x16x32xbf16> to vector<2x16x8xbf16>
    "tpu.trace_start"() <{level = 10 : i32, message = "bqd,bkd->bqk"}> : () -> ()
    %cst_42 = arith.constant dense<0.000000e+00> : vector<2x16x16xf32>
    %106 = tpu.matmul %103, %104, %cst_42 {dimension_numbers = #tpu.dot_dimension_numbers<[2], [2], [1], [1], [0, 0, 0, 1, 1, 1], [0], [0]>} : vector<2x16x8xbf16>, vector<2x16x8xbf16>, vector<2x16x16xf32> -> vector<2x16x16xf32>
    "tpu.trace_stop"() : () -> ()
    %cst_43 = arith.constant 0.353553385 : f32
    %107 = vector.broadcast %cst_43 : f32 to vector<2x16x16xf32>
    %108 = arith.mulf %106, %107 : vector<2x16x16xf32>
    %cst_44 = arith.constant dense<0xFF800000> : vector<2x16xf32>
    %109 = vector.multi_reduction <maximumf>, %108, %cst_44 [2] : vector<2x16x16xf32> to vector<2x16xf32>
    %110 = vector.shape_cast %109 : vector<2x16xf32> to vector<2x16x1xf32>
    %111 = vector.broadcast %110 : vector<2x16x1xf32> to vector<2x16x16xf32>
    %112 = arith.subf %108, %111 : vector<2x16x16xf32>
    %113 = math.exp %112 : vector<2x16x16xf32>
    %cst_45 = arith.constant dense<0.000000e+00> : vector<2x16xf32>
    %114 = vector.multi_reduction <add>, %113, %cst_45 [2] : vector<2x16x16xf32> to vector<2x16xf32>
    %115 = vector.shape_cast %114 : vector<2x16xf32> to vector<2x16x1xf32>
    %116 = tpu.reciprocal %115 {approx = true} : vector<2x16x1xf32> -> vector<2x16x1xf32>
    %117 = vector.broadcast %116 : vector<2x16x1xf32> to vector<2x16x16xf32>
    %118 = arith.mulf %113, %117 : vector<2x16x16xf32>
    %119 = arith.truncf %118 : vector<2x16x16xf32> to vector<2x16x16xbf16>
    "tpu.trace_start"() <{level = 10 : i32, message = "bqk,bkd->bqd"}> : () -> ()
    %cst_46 = arith.constant dense<0.000000e+00> : vector<2x16x8xf32>
    %120 = tpu.matmul %119, %105, %cst_46 {dimension_numbers = #tpu.dot_dimension_numbers<[2], [1], [1], [2], [0, 0, 0, 1, 1, 2], [0], [0]>} : vector<2x16x16xbf16>, vector<2x16x8xbf16>, vector<2x16x8xf32> -> vector<2x16x8xf32>
    "tpu.trace_stop"() : () -> ()
    %c0_47 = arith.constant 0 : index
    %c0_48 = arith.constant 0 : index
    %c24 = arith.constant 24 : index
    %121 = vector.load %arg16[%c0_47, %c0_48, %c24] : memref<2x16x32xf32, #tpu.memory_space<vmem>>, vector<2x16x8xf32>
    tpu.vector_store %arg16[%c0_47, %c0_48, %c24], %120 {strides = array<i32>} : memref<2x16x32xf32, #tpu.memory_space<vmem>>, vector<2x16x8xf32>,
    %c0_49 = arith.constant 0 : index
    %c0_50 = arith.constant 0 : index
    %c0_51 = arith.constant 0 : index
    %122 = vector.load %arg16[%c0_49, %c0_50, %c0_51] : memref<2x16x32xf32, #tpu.memory_space<vmem>>, vector<2x16x32xf32>
    %123 = vector.shape_cast %122 : vector<2x16x32xf32> to vector<32x32xf32>
    %124 = arith.truncf %123 : vector<32x32xf32> to vector<32x32xbf16>
    %c0_52 = arith.constant 0 : index
    %c0_53 = arith.constant 0 : index
    %c0_54 = arith.constant 0 : index
    %125 = vector.load %arg7[%c0_52, %c0_53, %c0_54] : memref<1x32x32xbf16, #tpu.memory_space<vmem>>, vector<1x32x32xbf16>
    %126 = vector.shape_cast %125 : vector<1x32x32xbf16> to vector<32x32xbf16>
    %cst_55 = arith.constant dense<0.000000e+00> : vector<32x32xf32>
    %127 = tpu.matmul %124, %126, %cst_55 {dimension_numbers = #tpu.dot_dimension_numbers<[1], [0], [0], [1], [0, 0, 1, 1], [], []>} : vector<32x32xbf16>, vector<32x32xbf16>, vector<32x32xf32> -> vector<32x32xf32>
    %c0_56 = arith.constant 0 : index
    %c0_57 = arith.constant 0 : index
    %c0_58 = arith.constant 0 : index
    %128 = vector.load %arg8[%c0_56, %c0_57, %c0_58] : memref<1x1x32xf32, #tpu.memory_space<vmem>>, vector<1x1x32xf32>
    %129 = vector.shape_cast %128 : vector<1x1x32xf32> to vector<1x32xf32>
    %130 = vector.broadcast %129 : vector<1x32xf32> to vector<32x32xf32>
    %131 = arith.addf %127, %130 : vector<32x32xf32>
    %132 = arith.addf %4, %131 : vector<32x32xf32>
    %cst_59 = arith.constant dense<0.000000e+00> : vector<32xf32>
    %133 = vector.multi_reduction <add>, %132, %cst_59 [1] : vector<32x32xf32> to vector<32xf32>
    %134 = vector.shape_cast %133 : vector<32xf32> to vector<32x1xf32>
    %cst_60 = arith.constant 3.200000e+01 : f32
    %135 = vector.broadcast %cst_60 : f32 to vector<32x1xf32>
    %136 = arith.divf %134, %135 : vector<32x1xf32>
    %137 = vector.broadcast %136 : vector<32x1xf32> to vector<32x32xf32>
    %138 = arith.subf %132, %137 : vector<32x32xf32>
    %139 = arith.mulf %138, %138 : vector<32x32xf32>
    %cst_61 = arith.constant dense<0.000000e+00> : vector<32xf32>
    %140 = vector.multi_reduction <add>, %139, %cst_61 [1] : vector<32x32xf32> to vector<32xf32>
    %141 = vector.shape_cast %140 : vector<32xf32> to vector<32x1xf32>
    %cst_62 = arith.constant 3.200000e+01 : f32
    %142 = vector.broadcast %cst_62 : f32 to vector<32x1xf32>
    %143 = arith.divf %141, %142 : vector<32x1xf32>
    %144 = vector.broadcast %136 : vector<32x1xf32> to vector<32x32xf32>
    %145 = arith.subf %132, %144 : vector<32x32xf32>
    %cst_63 = arith.constant 9.99999974E-6 : f32
    %146 = vector.broadcast %cst_63 : f32 to vector<32x1xf32>
    %147 = arith.addf %143, %146 : vector<32x1xf32>
    %148 = math.rsqrt %147 : vector<32x1xf32>
    %149 = vector.broadcast %148 : vector<32x1xf32> to vector<32x32xf32>
    %150 = arith.mulf %145, %149 : vector<32x32xf32>
    %c0_64 = arith.constant 0 : index
    %c0_65 = arith.constant 0 : index
    %c0_66 = arith.constant 0 : index
    %151 = vector.load %arg9[%c0_64, %c0_65, %c0_66] : memref<1x1x32xf32, #tpu.memory_space<vmem>>, vector<1x1x32xf32>
    %152 = vector.shape_cast %151 : vector<1x1x32xf32> to vector<1x32xf32>
    %153 = vector.broadcast %152 : vector<1x32xf32> to vector<32x32xf32>
    %154 = arith.mulf %150, %153 : vector<32x32xf32>
    %c0_67 = arith.constant 0 : index
    %c0_68 = arith.constant 0 : index
    %c0_69 = arith.constant 0 : index
    %155 = vector.load %arg10[%c0_67, %c0_68, %c0_69] : memref<1x1x32xf32, #tpu.memory_space<vmem>>, vector<1x1x32xf32>
    %156 = vector.shape_cast %155 : vector<1x1x32xf32> to vector<1x32xf32>
    %157 = vector.broadcast %156 : vector<1x32xf32> to vector<32x32xf32>
    %158 = arith.addf %154, %157 : vector<32x32xf32>
    %159 = arith.truncf %158 : vector<32x32xf32> to vector<32x32xbf16>
    %c0_70 = arith.constant 0 : index
    %c0_71 = arith.constant 0 : index
    %c0_72 = arith.constant 0 : index
    %160 = vector.load %arg11[%c0_70, %c0_71, %c0_72] : memref<1x32x64xbf16, #tpu.memory_space<vmem>>, vector<1x32x64xbf16>
    %161 = vector.shape_cast %160 : vector<1x32x64xbf16> to vector<32x64xbf16>
    %cst_73 = arith.constant dense<0.000000e+00> : vector<32x64xf32>
    %162 = tpu.matmul %159, %161, %cst_73 {dimension_numbers = #tpu.dot_dimension_numbers<[1], [0], [0], [1], [0, 0, 1, 1], [], []>} : vector<32x32xbf16>, vector<32x64xbf16>, vector<32x64xf32> -> vector<32x64xf32>
    %c0_74 = arith.constant 0 : index
    %c0_75 = arith.constant 0 : index
    %c0_76 = arith.constant 0 : index
    %163 = vector.load %arg12[%c0_74, %c0_75, %c0_76] : memref<1x1x64xf32, #tpu.memory_space<vmem>>, vector<1x1x64xf32>
    %164 = vector.shape_cast %163 : vector<1x1x64xf32> to vector<1x64xf32>
    %165 = vector.broadcast %164 : vector<1x64xf32> to vector<32x64xf32>
    %166 = arith.addf %162, %165 : vector<32x64xf32>
    %cst_77 = arith.constant 5.000000e-01 : f32
    %167 = vector.broadcast %cst_77 : f32 to vector<32x64xf32>
    %168 = arith.mulf %167, %166 : vector<32x64xf32>
    %cst_78 = arith.constant 4.471500e-02 : f32
    %169 = vector.broadcast %cst_78 : f32 to vector<32x64xf32>
    %170 = arith.mulf %169, %166 : vector<32x64xf32>
    %171 = arith.mulf %170, %166 : vector<32x64xf32>
    %172 = arith.mulf %171, %166 : vector<32x64xf32>
    %173 = arith.addf %166, %172 : vector<32x64xf32>
    %cst_79 = arith.constant 0.797884583 : f32
    %174 = vector.broadcast %cst_79 : f32 to vector<32x64xf32>
    %175 = arith.mulf %174, %173 : vector<32x64xf32>
    %176 = math.tanh %175 : vector<32x64xf32>
    %cst_80 = arith.constant 1.000000e+00 : f32
    %177 = vector.broadcast %cst_80 : f32 to vector<32x64xf32>
    %178 = arith.addf %177, %176 : vector<32x64xf32>
    %179 = arith.mulf %168, %178 : vector<32x64xf32>
    %180 = arith.truncf %179 : vector<32x64xf32> to vector<32x64xbf16>
    %c0_81 = arith.constant 0 : index
    %c0_82 = arith.constant 0 : index
    %c0_83 = arith.constant 0 : index
    %181 = vector.load %arg13[%c0_81, %c0_82, %c0_83] : memref<1x64x32xbf16, #tpu.memory_space<vmem>>, vector<1x64x32xbf16>
    %182 = vector.shape_cast %181 : vector<1x64x32xbf16> to vector<64x32xbf16>
    %cst_84 = arith.constant dense<0.000000e+00> : vector<32x32xf32>
    %183 = tpu.matmul %180, %182, %cst_84 {dimension_numbers = #tpu.dot_dimension_numbers<[1], [0], [0], [1], [0, 0, 1, 1], [], []>} : vector<32x64xbf16>, vector<64x32xbf16>, vector<32x32xf32> -> vector<32x32xf32>
    %c0_85 = arith.constant 0 : index
    %c0_86 = arith.constant 0 : index
    %c0_87 = arith.constant 0 : index
    %184 = vector.load %arg14[%c0_85, %c0_86, %c0_87] : memref<1x1x32xf32, #tpu.memory_space<vmem>>, vector<1x1x32xf32>
    %185 = vector.shape_cast %184 : vector<1x1x32xf32> to vector<1x32xf32>
    %186 = vector.broadcast %185 : vector<1x32xf32> to vector<32x32xf32>
    %187 = arith.addf %183, %186 : vector<32x32xf32>
    %188 = arith.addf %132, %187 : vector<32x32xf32>
    %189 = vector.shape_cast %188 : vector<32x32xf32> to vector<2x16x32xf32>
    %c0_88 = arith.constant 0 : index
    %c0_89 = arith.constant 0 : index
    %c0_90 = arith.constant 0 : index
    %190 = vector.load %arg15[%c0_88, %c0_89, %c0_90] : memref<2x16x32xf32, #tpu.memory_space<vmem>>, vector<2x16x32xf32>
    tpu.vector_store %arg15[%c0_88, %c0_89, %c0_90], %189 {strides = array<i32>} : memref<2x16x32xf32, #tpu.memory_space<vmem>>, vector<2x16x32xf32>,
    return
  }
  func.func @transform_0(%arg0: i32, %arg1: i32) -> (i32, i32, i32) {
    %c0_i32 = arith.constant 0 : i32
    %c0_i32_0 = arith.constant 0 : i32
    %c0_i32_1 = arith.constant 0 : i32
    return %arg0, %c0_i32, %c0_i32_0 : i32, i32, i32
  }
  func.func @transform_1(%arg0: i32, %arg1: i32) -> (i32, i32, i32) {
    %c0_i32 = arith.constant 0 : i32
    %c0_i32_0 = arith.constant 0 : i32
    %c0_i32_1 = arith.constant 0 : i32
    return %arg1, %c0_i32, %c0_i32_0 : i32, i32, i32
  }
  func.func @transform_2(%arg0: i32, %arg1: i32) -> (i32, i32, i32) {
    %c0_i32 = arith.constant 0 : i32
    %c0_i32_0 = arith.constant 0 : i32
    %c0_i32_1 = arith.constant 0 : i32
    return %arg1, %c0_i32, %c0_i32_0 : i32, i32, i32
  }
  func.func @transform_3(%arg0: i32, %arg1: i32) -> (i32, i32, i32) {
    %c0_i32 = arith.constant 0 : i32
    %c0_i32_0 = arith.constant 0 : i32
    %c0_i32_1 = arith.constant 0 : i32
    return %arg1, %c0_i32, %c0_i32_0 : i32, i32, i32
  }
  func.func @transform_4(%arg0: i32, %arg1: i32) -> (i32, i32, i32) {
    %c0_i32 = arith.constant 0 : i32
    %c0_i32_0 = arith.constant 0 : i32
    %c0_i32_1 = arith.constant 0 : i32
    return %arg1, %c0_i32, %c0_i32_0 : i32, i32, i32
  }
  func.func @transform_5(%arg0: i32, %arg1: i32) -> (i32, i32, i32) {
    %c0_i32 = arith.constant 0 : i32
    %c0_i32_0 = arith.constant 0 : i32
    %c0_i32_1 = arith.constant 0 : i32
    return %arg1, %c0_i32, %c0_i32_0 : i32, i32, i32
  }
  func.func @transform_6(%arg0: i32, %arg1: i32) -> (i32, i32, i32) {
    %c0_i32 = arith.constant 0 : i32
    %c0_i32_0 = arith.constant 0 : i32
    %c0_i32_1 = arith.constant 0 : i32
    return %arg1, %c0_i32, %c0_i32_0 : i32, i32, i32
  }
  func.func @transform_7(%arg0: i32, %arg1: i32) -> (i32, i32, i32) {
    %c0_i32 = arith.constant 0 : i32
    %c0_i32_0 = arith.constant 0 : i32
    %c0_i32_1 = arith.constant 0 : i32
    return %arg1, %c0_i32, %c0_i32_0 : i32, i32, i32
  }
  func.func @transform_8(%arg0: i32, %arg1: i32) -> (i32, i32, i32) {
    %c0_i32 = arith.constant 0 : i32
    %c0_i32_0 = arith.constant 0 : i32
    %c0_i32_1 = arith.constant 0 : i32
    return %arg1, %c0_i32, %c0_i32_0 : i32, i32, i32
  }
  func.func @transform_9(%arg0: i32, %arg1: i32) -> (i32, i32, i32) {
    %c0_i32 = arith.constant 0 : i32
    %c0_i32_0 = arith.constant 0 : i32
    %c0_i32_1 = arith.constant 0 : i32
    return %arg1, %c0_i32, %c0_i32_0 : i32, i32, i32
  }
  func.func @transform_10(%arg0: i32, %arg1: i32) -> (i32, i32, i32) {
    %c0_i32 = arith.constant 0 : i32
    %c0_i32_0 = arith.constant 0 : i32
    %c0_i32_1 = arith.constant 0 : i32
    return %arg1, %c0_i32, %c0_i32_0 : i32, i32, i32
  }
  func.func @transform_11(%arg0: i32, %arg1: i32) -> (i32, i32, i32) {
    %c0_i32 = arith.constant 0 : i32
    %c0_i32_0 = arith.constant 0 : i32
    %c0_i32_1 = arith.constant 0 : i32
    return %arg1, %c0_i32, %c0_i32_0 : i32, i32, i32
  }
  func.func @transform_12(%arg0: i32, %arg1: i32) -> (i32, i32, i32) {
    %c0_i32 = arith.constant 0 : i32
    %c0_i32_0 = arith.constant 0 : i32
    %c0_i32_1 = arith.constant 0 : i32
    return %arg1, %c0_i32, %c0_i32_0 : i32, i32, i32
  }
  func.func @transform_13(%arg0: i32, %arg1: i32) -> (i32, i32, i32) {
    %c0_i32 = arith.constant 0 : i32
    %c0_i32_0 = arith.constant 0 : i32
    %c0_i32_1 = arith.constant 0 : i32
    return %arg0, %c0_i32, %c0_i32_0 : i32, i32, i32
  }
}

</mosaic_0001>

<bundles_post_ra>
// kernel: vit_encoder_forward.1
= control target key start
LH: loop header
LB: loop body
LE: loop exit
PB: predicated region body
PF: predicated region fallthrough
CT: control target
= control target key end

     0   :  { %s4487_s0 = inlined_call_operand.vmem [shape: f32[4,16,32], index: 0, kind: input, shape index: {}]   ;;  %s4488_s1 = inlined_call_operand.vmem [shape: f32[2,1,32], index: 1, kind: input, shape index: {}]   ;;  %s4489_s2 = inlined_call_operand.vmem [shape: f32[2,1,32], index: 2, kind: input, shape index: {}]   ;;  %s4490_s3 = inlined_call_operand.vmem [shape: bf16[2,32,96], index: 3, kind: input, shape index: {}]   ;;  %s4491_s4 = inlined_call_operand.hbm [shape: f32[2,1,96], index: 4, kind: input, shape index: {}]   ;;  %s4492_s5 = inlined_call_operand.hbm [shape: bf16[2,32,32], index: 5, kind: input, shape index: {}]   ;;  %s4493_s6 = inlined_call_operand.hbm [shape: f32[2,1,32], index: 6, kind: input, shape index: {}]   ;;  %s4494_s7 = inlined_call_operand.hbm [shape: f32[2,1,32], index: 7, kind: input, shape index: {}]   ;;  %s4495_s8 = inlined_call_operand.hbm [shape: f32[2,1,32], index: 8, kind: input, shape index: {}]   ;;  %s4496_s9 = inlined_call_operand.hbm [shape: bf16[2,32,64], index: 9, kind: input, shape index: {}]   ;;  %s4497_s10 = inlined_call_operand.hbm [shape: f32[2,1,64], index: 10, kind: input, shape index: {}]   ;;  %s4498_s11 = inlined_call_operand.vmem [shape: bf16[2,64,32], index: 11, kind: input, shape index: {}]   ;;  %s4499_s12 = inlined_call_operand.hbm [shape: f32[2,1,32], index: 12, kind: input, shape index: {}]   ;;  %s4500_s13 = inlined_call_operand.hbm [shape: f32[4,16,32], index: 13, kind: output, shape index: {}]  }
   0x1   :  { %4525 = sst [smem:[#allocation36_spill]] %s4487_s0 }
   0x2   :  { %4526 = sst [smem:[#allocation37_spill]] %s4488_s1 }
   0x3   :  { %4527 = sst [smem:[#allocation38_spill]] %s4489_s2 }
   0x4   :  { %4528 = sst [smem:[#allocation39_spill]] %s4490_s3 }
   0x5   :  { %4529 = sst [smem:[#allocation40_spill]] %s4491_s4 }
   0x6   :  { %4530 = sst [smem:[#allocation41_spill]] %s4492_s5 }
   0x7   :  { %4531 = sst [smem:[#allocation42_spill]] %s4493_s6 }
   0x8   :  { %4532 = sst [smem:[#allocation43_spill]] %s4494_s7 }
   0x9   :  { %4533 = sst [smem:[#allocation44_spill]] %s4495_s8 }
   0xa   :  { %4534 = sst [smem:[#allocation45_spill]] %s4496_s9 }
   0xb   :  { %4535 = sst [smem:[#allocation46_spill]] %s4497_s10 }
   0xc   :  { %4536 = sst [smem:[#allocation47_spill]] %s4498_s11 }
   0xd   :  { %4537 = sst [smem:[#allocation48_spill]] %s4499_s12 }
   0xe   :  { %4538 = sst [smem:[#allocation49_spill]] %s4500_s13 }
   0xf   :  { %18 = vsyncpa [#allocation4], 0 }
  0x10   :  { %20 = vsyncpa [#allocation4 + $0x1], 0 }
  0x11   :  { %21 = vsyncpa [#allocation7], 0 }
  0x12   :  { %23 = vsyncpa [#allocation7 + $0x1], 0 }
  0x13   :  { %24 = vsyncpa [#allocation10], 0 }
  0x14   :  { %26 = vsyncpa [#allocation10 + $0x1], 0 }
  0x15   :  { %27 = vsyncpa [#allocation13], 0 }
  0x16   :  { %29 = vsyncpa [#allocation13 + $0x1], 0 }
  0x17   :  { %30 = vsyncpa [#allocation16], 0 }
  0x18   :  { %32 = vsyncpa [#allocation16 + $0x1], 0 }
  0x19   :  { %33 = vsyncpa [#allocation5], 0 }
  0x1a   :  { %35 = vsyncpa [#allocation5 + $0x1], 0  ;;  %s3698_s25 = smov 0   ;;  %s3700_s26 = smov 0  }
  0x1b   :  { %s3702_s27 = smov 0   ;;  %s3704_s28 = smov 0  }
  0x1c   :  { %s3706_s29 = smov 0   ;;  %s3708_s30 = smov 0  }
  0x1d   :  { %s3710_s14 = smov 0   ;;  %s3712_s15 = smov 0  }
  0x1e   :  { %s3714_s16 = smov 0   ;;  %s3716_s17 = smov 0  }
  0x1f   :  { %s3718_s18 = smov 0  }
  0x20 LB: > { %4539 = sst [smem:[#allocation24_spill]] %s3558_s25  ;;  %s3752_s19 = sadd.s32 4294967295, %s3598_s18   ;;  %s3598_s18 = sphi %s3718_s18, %s41_s18   ;;  %s3594_s17 = sphi %s3716_s17, %s4612_s17   ;;  %s3590_s16 = sphi %s3714_s16, %s4611_s16   ;;  %s3586_s15 = sphi %s3712_s15, %s4610_s15   ;;  %s3582_s14 = sphi %s3710_s14, %s4609_s14   ;;  %s3578_s30 = sphi %s3708_s30, %s4608_s30   ;;  %s3574_s29 = sphi %s3706_s29, %s4616_s29   ;;  %s3570_s28 = sphi %s3704_s28, %s4615_s28   ;;  %s3566_s27 = sphi %s3702_s27, %s4606_s27   ;;  %s3562_s26 = sphi %s3700_s26, %s4614_s26   ;;  %s3558_s25 = sphi %s3698_s25, %s4613_s25  }
  0x21   : > { %4540 = sst [smem:[#allocation25_spill]] %s3566_s27  ;;  %s2698_s20 = sadd.s32 4294967294, %s3598_s18  }
  0x22   : > { %4541 = sst [smem:[#allocation26_spill]] %s3578_s30  ;;  %s50_s21 = sadd.s32 1, %s3590_s16 }
  0x23   : > { %4542 = sst [smem:[#allocation27_spill]] %s3590_s16  ;;  %s53_s22 = sadd.s32 1, %s3594_s17 }
  0x24   : > { %4543 = sst [smem:[#allocation28_spill]] %s3594_s17  ;;  %p51_p0 = scmp.ge.s32.totalorder %s50_s21, 2 }
  0x25   : > { %4544 = sst [smem:[#allocation29_spill]] %s3598_s18  ;;  %s164_s23 = sadd.s32 1, %s3578_s30 }
  0x26   : > { %p171_p1 = scmp.ne.s32.totalorder %s3578_s30, %s3574_s29  ;;  %p172_p2 = scmp.eq.s32.totalorder %s3598_s18, 0 }
  0x27   : > { %s4618_s21 = smov (%p51_p0, %s50_s21), 0  ;;  %s4620_s22 = smov (!%p51_p0, %s53_s22), %s3594_s17 }
  0x28   : > { %4545 = sst [smem:[#allocation30_spill]] %s4618_s21  ;;  %s161_s24 = ssub.s32 %s3590_s16, %s4618_s21 }
  0x29   : > { %p3766_p3 = por %p172_p2, %p171_p1  ;;  %p55_p4 = scmp.ge.s32.totalorder %s4620_s22, 2 }
  0x2a   : > { %p162_p5 = scmp.eq.s32.totalorder %s161_s24, 0  ;;  %p177_p6 = scmp.ne.s32.totalorder %s3574_s29, %s3570_s28 }
  0x2b   : > { %p178_p7 = scmp.eq.s32.totalorder %s3752_s19, 0  ;;  %s4622_s22 = smov (%p55_p4, %s4620_s22), 0 }
  0x2c   : > { %4547 = sst [smem:[#allocation31_spill]] %s4622_s22  ;;  %s395_s3 = ssub.s32 %s3594_s17, %s4622_s22 }
  0x2d   : > { %s3775_s11 = scalar_select %p162_p5, %s3578_s30, %s164_s23  }
  0x2e   : > { %p3777_p8 = por %p178_p7, %p177_p6  ;;  %p396_p9 = scmp.eq.s32.totalorder %s395_s3, 0 }
  0x2f   : > { %4548 = sst [smem:[#allocation32_spill]] %s3775_s11  ;;  %s398_s2 = sadd.s32 1, %s3566_s27 }
  0x30   : > { %s4549_s21 = scalar_select %p3777_p8, 1, 0 }
  0x31   : > { %p408_p10 = scmp.ne.s32.totalorder %s3566_s27, %s3562_s26  ;;  %p409_p11 = scmp.eq.s32.totalorder %s3752_s19, 3 }
  0x32   : > { %s3788_s28 = scalar_select %p396_p9, %s3566_s27, %s398_s2  }
  0x33   : > { %p3790_p12 = por %p409_p11, %p408_p10  ;;  %p414_p13 = scmp.ne.s32.totalorder %s3562_s26, %s3558_s25 }
  0x34   : > { %4550 = sst [smem:[#allocation33_spill]] %s3788_s28  ;;  %p415_p0 = scmp.eq.s32.totalorder %s2698_s20, 3 }
  0x35   : > { %s4551_s24 = scalar_select %p3790_p12, 1, 0 }
  0x36   : > { %p3009_p1 = scmp.lt.s32.totalorder %s3598_s18, 4  ;;  %s3798_s23 = sand.u32 1, %s3578_s30  }
  0x37   : > { %4552 = sst [smem:[#allocation34_spill]] %s4551_s24  ;;  %p3800_p2 = por %p415_p0, %p414_p13 }
  0x38   : > { %s3805_s3 = sand.u32 1, %s3598_s18   ;;  %p3809_p4 = pnand %p3009_p1, %p3766_p3 }
  0x39   : > { %s4553_s22 = scalar_select %p3800_p2, 1, 0 }
  0x3a   : > { %s4555_s2 = scalar_select %p3809_p4, 1, 0 }
  0x3b   : > { %4554 = sst [smem:[#allocation35_spill]] %s4553_s22  ;;  %s4511_s17 = sshll.u32 %s3798_s23, 4 }
  0x3c   : > { %s4512_s20 = sshll.u32 %s3590_s16, 8  ;;  %s4556_s5 = sld [smem:[#allocation41_spill]] }
  0x3d   : > { %s486_s13 = scalar_lea.vmem [#allocation6], %s4511_s17  ;;  %p3832_p6 = pneg %p3809_p4 }
  0x3e   : > { %s493_s27 = sshll.u32 %s486_s13, 4  ;;  %s3824_s27 = int_to_ptr.vmem [resolvable:$true] %s493_s27 }
  0x42   : > { %s3820_s28 = scalar_lea.hbm %s4556_s5, %s4512_s20  ;;  %s3225_s17 = scalar_lea.hbm %s4556_s5, 512 }
  0x43   : > { %s3220_s25 = scalar_lea.hbm %s3820_s28, 256  ;;  %p3226_p10 = scmp.lt.u32.totalorder %s3820_s28, %s4556_s5 }
  0x44   : > { %p3221_p5 = scmp.ne.s32.totalorder %s3820_s28, %s3220_s25  ;;  %p3227_p11 = scmp.lt.u32.totalorder %s3225_s17, %s3220_s25 }
  0x45   : > { %p3229_p0 = scmp.lt.u32.totalorder %s3220_s25, %s3820_s28 }
  0x46   : > { %p3223_p7 = pnand %p3832_p6, %p3221_p5  ;;  %p3228_p13 = por %p3227_p11, %p3226_p10 }
  0x48   : > { %p3224_p9 = pneg %p3223_p7  ;;  %p3230_p1 = por %p3229_p0, %p3228_p13 }
  0x4a   : > { %p3231_p3 = pnand %p3230_p1, %p3224_p9 }
  0x4c   : > { %3234 = shalt.err (!%p3231_p3)
}
  0x4d   : > { %s3235_s22 = scalar_lea.vmem %s3824_s27, 256  ;;  %s3600_s11 = smov [#allocation6]  }
  0x4e   : > { %p3236_p5 = scmp.ne.s32.totalorder %s3824_s27, %s3235_s22  ;;  %s3240_s30 = sshll.u32 %s3600_s11, 4  ;;  %s3241_s30 = int_to_ptr.vmem [resolvable:$false] %s3240_s30 }
  0x4f   : > { %s3242_s20 = scalar_lea.vmem %s3241_s30, 512  ;;  %p3243_p12 = scmp.lt.s32.totalorder %s3824_s27, %s3241_s30 }
  0x50   : > { %p3238_p7 = pnand %p3236_p5, %p3832_p6  ;;  %p3244_p8 = scmp.lt.s32.totalorder %s3242_s20, %s3235_s22 }
  0x52   : > { %p3239_p2 = pneg %p3238_p7  ;;  %p3245_p10 = por %p3244_p8, %p3243_p12 }
  0x54   : > { %p3246_p11 = pnand %p3245_p10, %p3239_p2 }
  0x56   : > { %3249 = shalt.err (!%p3246_p11)
}
  0x57   : > { %s4515_s25 = smov 64   ;;  %s4516_s17 = smov 4  }
  0x58   : > { %s4558_s22 = scalar_lea.sflag [#allocation7], %s3805_s3  ;;  %p615_p8 = scmp.lt.s32.totalorder %s3598_s18, 5 }
  0x59   : > { %2986 = dma.hbm_to_vmem [thread:$0]  (!%p3809_p4), %s3820_s28, 256, %s3824_s27, %s4558_s22, %s4515_s25, %s4515_s25, %s4516_s17  }
  0x5a   : > { %s3862_s13 = sshll.u32 %s3590_s16, 4  ;;  %p4559_p12 = scmp.ge.s32.totalorder %s3598_s18, 1 }
  0x5b   : > { %s4561_s7 = sld [smem:[#allocation43_spill]]  ;;  %s523_s1 = scalar_lea.vmem [#allocation9], %s3798_s23 }
  0x5c   : > { %p3866_p2 = pnand %p4559_p12, %p615_p8  ;;  %s530_s27 = sshll.u32 %s523_s1, 4  ;;  %s531_s27 = int_to_ptr.vmem [resolvable:$true] %s530_s27 }
  0x5e   : > { %s4560_s11 = scalar_select %p3866_p2, 1, 0 }
  0x61   : > { %s3874_s5 = scalar_lea.hbm %s4561_s7, %s3862_s13  ;;  %s3255_s18 = scalar_lea.hbm %s4561_s7, 32 }
  0x62   : > { %s3250_s22 = scalar_lea.hbm %s3874_s5, 16  ;;  %p3256_p0 = scmp.lt.u32.totalorder %s3874_s5, %s4561_s7 }
  0x63   : > { %p3251_p3 = scmp.ne.s32.totalorder %s3874_s5, %s3250_s22  ;;  %p3257_p1 = scmp.lt.u32.totalorder %s3255_s18, %s3250_s22 }
  0x64   : > { %p3259_p7 = scmp.lt.u32.totalorder %s3250_s22, %s3874_s5 }
  0x65   : > { %p3253_p9 = pnand %p3251_p3, %p3832_p6  ;;  %p3258_p5 = por %p3257_p1, %p3256_p0 }
  0x67   : > { %p3254_p13 = pneg %p3253_p9  ;;  %p3260_p10 = por %p3259_p7, %p3258_p5 }
  0x69   : > { %p3261_p11 = pnand %p3260_p10, %p3254_p13 }
  0x6b   : > { %3264 = shalt.err (!%p3261_p11)
}
  0x6c   : > { %s3265_s1 = scalar_lea.vmem %s531_s27, 16  ;;  %s3603_s28 = smov [#allocation9]  }
  0x6d   : > { %p3266_p8 = scmp.ne.s32.totalorder %s531_s27, %s3265_s1  ;;  %s3270_s0 = sshll.u32 %s3603_s28, 4  ;;  %s3271_s0 = int_to_ptr.vmem [resolvable:$false] %s3270_s0 }
  0x6e   : > { %s3272_s25 = scalar_lea.vmem %s3271_s0, 32  ;;  %p3273_p9 = scmp.lt.s32.totalorder %s531_s27, %s3271_s0 }
  0x6f   : > { %p3268_p12 = pnand %p3266_p8, %p3832_p6  ;;  %p3274_p2 = scmp.lt.s32.totalorder %s3272_s25, %s3265_s1 }
  0x71   : > { %p3269_p3 = pneg %p3268_p12  ;;  %p3275_p4 = por %p3274_p2, %p3273_p9 }
  0x73   : > { %p3276_p0 = pnand %p3275_p4, %p3269_p3 }
  0x75   : > { %3279 = shalt.err (!%p3276_p0)
}
  0x76   : > { %p4562_p1 = scmp.ne.s32.totalorder %s4555_s2, 0  ;;  %s4563_s18 = scalar_lea.sflag [#allocation10], %s3805_s3 }
  0x77   : > { %s4564_s17 = sshll.u32 %s3590_s16, 8  ;;  %s4565_s9 = sld [smem:[#allocation45_spill]] }
  0x78   : > { %2992 = dma.hbm_to_vmem [thread:$0]  (!%p4562_p1), %s3874_s5, 16, %s531_s27, %s4563_s18  }
  0x79   : > { %s4566_s0 = sshll.u32 %s3798_s23, 4  ;;  %s4522_s25 = scalar_lea.sflag [#allocation13], %s3805_s3 }
  0x7a   : > { %s558_s20 = scalar_lea.vmem [#allocation12], %s4566_s0 }
  0x7b   : > { %s565_s1 = sshll.u32 %s558_s20, 4  ;;  %s3906_s1 = int_to_ptr.vmem [resolvable:$true] %s565_s1 }
  0x7d   : > { %s3902_s30 = scalar_lea.hbm %s4565_s9, %s4564_s17  ;;  %s3285_s18 = scalar_lea.hbm %s4565_s9, 512 }
  0x7e   : > { %s3280_s7 = scalar_lea.hbm %s3902_s30, 256  ;;  %p3286_p5 = scmp.lt.u32.totalorder %s3902_s30, %s4565_s9 }
  0x7f   : > { %p3281_p4 = scmp.ne.s32.totalorder %s3902_s30, %s3280_s7  ;;  %p3287_p7 = scmp.lt.u32.totalorder %s3285_s18, %s3280_s7 }
  0x80   : > { %p3289_p11 = scmp.lt.u32.totalorder %s3280_s7, %s3902_s30 }
  0x81   : > { %p3283_p2 = pnand %p3281_p4, %p3832_p6  ;;  %p3288_p10 = por %p3287_p7, %p3286_p5 }
  0x83   : > { %p3284_p13 = pneg %p3283_p2  ;;  %p3290_p8 = por %p3289_p11, %p3288_p10 }
  0x85   : > { %p3291_p12 = pnand %p3290_p8, %p3284_p13 }
  0x87   : > { %3294 = shalt.err (!%p3291_p12)
}
  0x88   : > { %s3295_s28 = scalar_lea.vmem %s3906_s1, 256  ;;  %s3604_s0 = smov [#allocation12]  }
  0x89   : > { %p3296_p3 = scmp.ne.s32.totalorder %s3906_s1, %s3295_s28  ;;  %s3300_s20 = sshll.u32 %s3604_s0, 4  ;;  %s3301_s20 = int_to_ptr.vmem [resolvable:$false] %s3300_s20 }
  0x8a   : > { %s3302_s5 = scalar_lea.vmem %s3301_s20, 512  ;;  %p3303_p4 = scmp.lt.s32.totalorder %s3906_s1, %s3301_s20 }
  0x8b   : > { %p3298_p9 = pnand %p3296_p3, %p3832_p6  ;;  %p3304_p2 = scmp.lt.s32.totalorder %s3302_s5, %s3295_s28 }
  0x8d   : > { %p3299_p0 = pneg %p3298_p9  ;;  %p3305_p5 = por %p3304_p2, %p3303_p4 }
  0x8f   : > { %p3306_p7 = pnand %p3305_p5, %p3299_p0 }
  0x91   : > { %3309 = shalt.err (!%p3306_p7)
}
  0x92   : > { %s4567_s7 = smov 4   ;;  %s4568_s27 = smov 64  }
  0x93   : > { %2998 = dma.hbm_to_vmem [thread:$0]  (!%p4562_p1), %s3902_s30, 256, %s3906_s1, %s4522_s25, %s4568_s27, %s4568_s27, %s4567_s7  }
  0x94   : > { %s4569_s4 = sld [smem:[#allocation40_spill]]  ;;  %s468_s28 = scalar_lea.vmem [#allocation3], %s3798_s23 }
  0x95   : > { %s475_s0 = sshll.u32 %s468_s28, 4  ;;  %s4570_s6 = sld [smem:[#allocation42_spill]]  ;;  %s3942_s0 = int_to_ptr.vmem [resolvable:$true] %s475_s0 }
  0x96   : > { %s466_s16 = scalar_lea.sflag [#allocation4], %s3798_s23 }
  0x9a   : > { %s3939_s22 = scalar_lea.hbm %s4569_s4, %s3862_s13  ;;  %s3315_s27 = scalar_lea.hbm %s4569_s4, 32 }
  0x9b   : > { %s3948_s9 = scalar_lea.hbm %s4570_s6, %s3862_s13  ;;  %s3310_s30 = scalar_lea.hbm %s3939_s22, 16 }
  0x9c   : > { %p3311_p13 = scmp.ne.s32.totalorder %s3939_s22, %s3310_s30  ;;  %p3316_p8 = scmp.lt.u32.totalorder %s3939_s22, %s4569_s4 }
  0x9d   : > { %p3317_p12 = scmp.lt.u32.totalorder %s3315_s27, %s3310_s30  ;;  %p3319_p9 = scmp.lt.u32.totalorder %s3310_s30, %s3939_s22 }
  0x9e   : > { %p3313_p10 = pnand %p3311_p13, %p3832_p6 }
  0x9f   : > { %p3318_p3 = por %p3317_p12, %p3316_p8 }
  0xa0   : > { %p3314_p11 = pneg %p3313_p10 }
  0xa1   : > { %p3320_p0 = por %p3319_p9, %p3318_p3 }
  0xa3   : > { %p3321_p4 = pnand %p3320_p0, %p3314_p11 }
  0xa5   : > { %3324 = shalt.err (!%p3321_p4)
}
  0xa6   : > { %s3325_s28 = scalar_lea.vmem %s3942_s0, 16  ;;  %s3605_s20 = smov [#allocation3]  }
  0xa7   : > { %p3326_p2 = scmp.ne.s32.totalorder %s3942_s0, %s3325_s28  ;;  %s3330_s5 = sshll.u32 %s3605_s20, 4  ;;  %s3331_s5 = int_to_ptr.vmem [resolvable:$false] %s3330_s5 }
  0xa8   : > { %s3332_s1 = scalar_lea.vmem %s3331_s5, 32  ;;  %p3333_p13 = scmp.lt.s32.totalorder %s3942_s0, %s3331_s5 }
  0xa9   : > { %p3328_p5 = pnand %p3326_p2, %p3832_p6  ;;  %p3334_p10 = scmp.lt.s32.totalorder %s3332_s1, %s3325_s28 }
  0xab   : > { %p3329_p7 = pneg %p3328_p5  ;;  %p3335_p8 = por %p3334_p10, %p3333_p13 }
  0xad   : > { %p3336_p12 = pnand %p3335_p8, %p3329_p7 }
  0xaf   : > { %3339 = shalt.err (!%p3336_p12)
}
  0xb0   : > { %2983 = dma.hbm_to_vmem [thread:$0]  (!%p4562_p1), %s3939_s22, 16, %s3942_s0, %s466_s16  }
  0xb1   : > { %s506_s30 = scalar_lea.vmem [#allocation8], %s3798_s23  ;;  %s4571_s8 = sld [smem:[#allocation44_spill]] }
  0xb2   : > { %s513_s7 = sshll.u32 %s506_s30, 4  ;;  %s3340_s28 = scalar_lea.hbm %s3948_s9, 16  ;;  %s514_s7 = int_to_ptr.vmem [resolvable:$true] %s513_s7 }
  0xb3   : > { %p3341_p11 = scmp.ne.s32.totalorder %s3948_s9, %s3340_s28  ;;  %s3345_s1 = scalar_lea.hbm %s4570_s6, 32 }
  0xb4   : > { %p3346_p0 = scmp.lt.u32.totalorder %s3948_s9, %s4570_s6  ;;  %p3347_p4 = scmp.lt.u32.totalorder %s3345_s1, %s3340_s28 }
  0xb5   : > { %p3343_p3 = pnand %p3341_p11, %p3832_p6  ;;  %p3349_p5 = scmp.lt.u32.totalorder %s3340_s28, %s3948_s9 }
  0xb6   : > { %p3348_p2 = por %p3347_p4, %p3346_p0 }
  0xb7   : > { %s3977_s17 = scalar_lea.hbm %s4571_s8, %s3862_s13  ;;  %p3344_p9 = pneg %p3343_p3 }
  0xb8   : > { %p3350_p7 = por %p3349_p5, %p3348_p2 }
  0xba   : > { %p3351_p13 = pnand %p3350_p7, %p3344_p9 }
  0xbc   : > { %3354 = shalt.err (!%p3351_p13)
}
  0xbd   : > { %s3355_s16 = scalar_lea.vmem %s514_s7, 16  ;;  %s3606_s22 = smov [#allocation8]  }
  0xbe   : > { %p3356_p10 = scmp.ne.s32.totalorder %s514_s7, %s3355_s16  ;;  %s3360_s0 = sshll.u32 %s3606_s22, 4  ;;  %s3361_s0 = int_to_ptr.vmem [resolvable:$false] %s3360_s0 }
  0xbf   : > { %s3362_s30 = scalar_lea.vmem %s3361_s0, 32  ;;  %p3363_p11 = scmp.lt.s32.totalorder %s514_s7, %s3361_s0 }
  0xc0   : > { %p3358_p8 = pnand %p3356_p10, %p3832_p6  ;;  %p3364_p3 = scmp.lt.s32.totalorder %s3362_s30, %s3355_s16 }
  0xc2   : > { %p3359_p12 = pneg %p3358_p8  ;;  %p3365_p1 = por %p3364_p3, %p3363_p11 }
  0xc4   : > { %p3366_p0 = pnand %p3365_p1, %p3359_p12 }
  0xc6   : > { %3369 = shalt.err (!%p3366_p0)
}
  0xc7   : > { %p4572_p4 = scmp.ne.s32.totalorder %s4555_s2, 0  ;;  %s4573_s4 = scalar_lea.sflag [#allocation7], %s3805_s3 }
  0xc8   : > { %s540_s25 = scalar_lea.vmem [#allocation11], %s3798_s23  ;;  %s4574_s10 = sld [smem:[#allocation46_spill]] }
  0xc9   : > { %2989 = dma.hbm_to_vmem [thread:$0]  (!%p4572_p4), %s3948_s9, 16, %s514_s7, %s4573_s4  }
  0xca   : > { %s547_s27 = sshll.u32 %s540_s25, 4  ;;  %s3370_s5 = scalar_lea.hbm %s3977_s17, 16  ;;  %s548_s27 = int_to_ptr.vmem [resolvable:$true] %s547_s27 }
  0xcb   : > { %p3371_p1 = scmp.ne.s32.totalorder %s3977_s17, %s3370_s5  ;;  %s3375_s22 = scalar_lea.hbm %s4571_s8, 32 }
  0xcc   : > { %p3376_p5 = scmp.lt.u32.totalorder %s3977_s17, %s4571_s8  ;;  %p3377_p7 = scmp.lt.u32.totalorder %s3375_s22, %s3370_s5 }
  0xcd   : > { %p3373_p9 = pnand %p3371_p1, %p3832_p6  ;;  %p3379_p10 = scmp.lt.u32.totalorder %s3370_s5, %s3977_s17 }
  0xce   : > { %s4003_s20 = scalar_lea.hbm %s4574_s10, %s3862_s13  ;;  %p3378_p13 = por %p3377_p7, %p3376_p5 }
  0xcf   : > { %p3374_p2 = pneg %p3373_p9 }
  0xd0   : > { %p3380_p8 = por %p3379_p10, %p3378_p13 }
  0xd2   : > { %p3381_p12 = pnand %p3380_p8, %p3374_p2 }
  0xd4   : > { %3384 = shalt.err (!%p3381_p12)
}
  0xd5   : > { %s3385_s9 = scalar_lea.vmem %s548_s27, 16  ;;  %s3607_s7 = smov [#allocation11]  }
  0xd6   : > { %p3386_p11 = scmp.ne.s32.totalorder %s548_s27, %s3385_s9  ;;  %s3390_s4 = sshll.u32 %s3607_s7, 4  ;;  %s3391_s4 = int_to_ptr.vmem [resolvable:$false] %s3390_s4 }
  0xd7   : > { %s3392_s25 = scalar_lea.vmem %s3391_s4, 32  ;;  %p3393_p1 = scmp.lt.s32.totalorder %s548_s27, %s3391_s4 }
  0xd8   : > { %p3388_p3 = pnand %p3386_p11, %p3832_p6  ;;  %p3394_p9 = scmp.lt.s32.totalorder %s3392_s25, %s3385_s9 }
  0xda   : > { %p3389_p0 = pneg %p3388_p3  ;;  %p3395_p4 = por %p3394_p9, %p3393_p1 }
  0xdc   : > { %p3396_p5 = pnand %p3395_p4, %p3389_p0 }
  0xde   : > { %3399 = shalt.err (!%p3396_p5)
}
  0xdf   : > { %p4575_p7 = scmp.ne.s32.totalorder %s4555_s2, 0  ;;  %s4576_s18 = scalar_lea.sflag [#allocation10], %s3805_s3 }
  0xe0   : > { %s578_s28 = scalar_lea.vmem [#allocation14], %s3798_s23  ;;  %s3400_s1 = scalar_lea.hbm %s4003_s20, 16 }
  0xe1   : > { %2995 = dma.hbm_to_vmem [thread:$0]  (!%p4575_p7), %s3977_s17, 16, %s548_s27, %s4576_s18  }
  0xe2   : > { %s585_s5 = sshll.u32 %s578_s28, 4  ;;  %p3401_p2 = scmp.ne.s32.totalorder %s4003_s20, %s3400_s1  ;;  %s586_s5 = int_to_ptr.vmem [resolvable:$true] %s585_s5 }
  0xe3   : > { %s3405_s0 = scalar_lea.hbm %s4574_s10, 32  ;;  %p3406_p10 = scmp.lt.u32.totalorder %s4003_s20, %s4574_s10 }
  0xe4   : > { %p3403_p4 = pnand %p3401_p2, %p3832_p6  ;;  %p3407_p8 = scmp.lt.u32.totalorder %s3405_s0, %s3400_s1 }
  0xe5   : > { %p3409_p11 = scmp.lt.u32.totalorder %s3400_s1, %s4003_s20 }
  0xe6   : > { %p3404_p13 = pneg %p3403_p4  ;;  %p3408_p12 = por %p3407_p8, %p3406_p10 }
  0xe8   : > { %p3410_p3 = por %p3409_p11, %p3408_p12 }
  0xea   : > { %p3411_p0 = pnand %p3410_p3, %p3404_p13 }
  0xec   : > { %3414 = shalt.err (!%p3411_p0)
}
  0xed   : > { %s3415_s17 = scalar_lea.vmem %s586_s5, 16  ;;  %s3608_s27 = smov [#allocation14]  }
  0xee   : > { %p3416_p1 = scmp.ne.s32.totalorder %s586_s5, %s3415_s17  ;;  %s3420_s7 = sshll.u32 %s3608_s27, 4  ;;  %s3421_s7 = int_to_ptr.vmem [resolvable:$false] %s3420_s7 }
  0xef   : > { %s3422_s4 = scalar_lea.vmem %s3421_s7, 32  ;;  %p3423_p2 = scmp.lt.s32.totalorder %s586_s5, %s3421_s7 }
  0xf0   : > { %p3418_p9 = pnand %p3416_p1, %p3832_p6  ;;  %p3424_p4 = scmp.lt.s32.totalorder %s3422_s4, %s3415_s17 }
  0xf2   : > { %p3419_p5 = pneg %p3418_p9  ;;  %p3425_p7 = por %p3424_p4, %p3423_p2 }
  0xf4   : > { %p3426_p8 = pnand %p3425_p7, %p3419_p5 }
  0xf6   : > { %3429 = shalt.err (!%p3426_p8)
}
  0xf7   : > { %p4577_p10 = scmp.ne.s32.totalorder %s4555_s2, 0  ;;  %s4578_s25 = scalar_lea.sflag [#allocation13], %s3805_s3 }
  0xf8   : > { %s4579_s12 = sld [smem:[#allocation48_spill]]  ;;  %s603_s16 = scalar_lea.vmem [#allocation15], %s3798_s23 }
  0xf9   : > { %3001 = dma.hbm_to_vmem [thread:$0]  (!%p4577_p10), %s4003_s20, 16, %s586_s5, %s4578_s25  }
  0xfa   : > { %s610_s22 = sshll.u32 %s603_s16, 4  ;;  %s601_s0 = scalar_lea.sflag [#allocation16], %s3798_s23  ;;  %s611_s22 = int_to_ptr.vmem [resolvable:$true] %s610_s22 }
  0xfe   : > { %s4048_s1 = scalar_lea.hbm %s4579_s12, %s3862_s13  ;;  %s3435_s5 = scalar_lea.hbm %s4579_s12, 32 }
  0xff   : > { %s3430_s3 = scalar_lea.hbm %s4048_s1, 16  ;;  %p3436_p11 = scmp.lt.u32.totalorder %s4048_s1, %s4579_s12 }
 0x100   : > { %p3431_p7 = scmp.ne.s32.totalorder %s4048_s1, %s3430_s3  ;;  %p3437_p3 = scmp.lt.u32.totalorder %s3435_s5, %s3430_s3 }
 0x101   : > { %p3439_p1 = scmp.lt.u32.totalorder %s3430_s3, %s4048_s1 }
 0x102   : > { %p3433_p13 = pnand %p3431_p7, %p3832_p6  ;;  %p3438_p0 = por %p3437_p3, %p3436_p11 }
 0x104   : > { %p3434_p12 = pneg %p3433_p13  ;;  %p3440_p9 = por %p3439_p1, %p3438_p0 }
 0x106   : > { %p3441_p5 = pnand %p3440_p9, %p3434_p12 }
 0x108   : > { %3444 = shalt.err (!%p3441_p5)
}
 0x109   : > { %s3445_s23 = scalar_lea.vmem %s611_s22, 16  ;;  %s3609_s17 = smov [#allocation15]  }
 0x10a   : > { %p3446_p2 = scmp.ne.s32.totalorder %s611_s22, %s3445_s23  ;;  %s3450_s27 = sshll.u32 %s3609_s17, 4  ;;  %s3451_s27 = int_to_ptr.vmem [resolvable:$false] %s3450_s27 }
 0x10b   : > { %s3452_s7 = scalar_lea.vmem %s3451_s27, 32  ;;  %p3453_p7 = scmp.lt.s32.totalorder %s611_s22, %s3451_s27 }
 0x10c   : > { %p3448_p4 = pnand %p3446_p2, %p3832_p6  ;;  %p3454_p13 = scmp.lt.s32.totalorder %s3452_s7, %s3445_s23 }
 0x10e   : > { %p3449_p8 = pneg %p3448_p4  ;;  %p3455_p10 = por %p3454_p13, %p3453_p7 }
 0x110   : > { %p3456_p3 = pnand %p3455_p10, %p3449_p8 }
 0x112   : > { %3459 = shalt.err (!%p3456_p3)
}
 0x113   : > { %p4580_p11 = scmp.ne.s32.totalorder %s4555_s2, 0  ;;  %p4581_p12 = scmp.ne.s32.totalorder %s4560_s11, 0 }
 0x114   : > { %s4072_s24 = sand.u32 (!%p4581_p12), 1, %s3574_s29   ;;  %p4582_p6 = scmp.ne.s32.totalorder (!%p4581_p12), %s4549_s21, 0 }
 0x115   : > { %3004 = dma.hbm_to_vmem [thread:$0]  (!%p4580_p11), %s4048_s1, 16, %s611_s22, %s601_s0  }
 0x116   : > { %619 = sbr.rel (%p4581_p12) target bundleno = 4531 (0x11b3), region = 72  ;;  %s622_s4 = scalar_lea.sflag (!%p4581_p12), [#allocation4], %s4072_s24 }
 0x11d   : > { %3533 = dma.done.wait (%p4582_p6), %s622_s4, 16  }
 0x11e   : > { %3535 = vsyncadd (%p4582_p6), %s622_s4, 4294967280  ;;  %s629_s2 = sand.u32 1, %s3752_s19   ;;  %s2714_s18 = sshll.u32 %s4072_s24, 4 }
 0x11f   : > { %s630_s11 = scalar_lea.sflag [#allocation7], %s629_s2  ;;  %s4082_s28 = scalar_lea.vmem [#allocation6], %s2714_s18 }
 0x120   : > { %3537 = dma.done.wait (%p4582_p6), %s630_s11, 272  }
 0x121   : > { %3539 = vsyncadd (%p4582_p6), %s630_s11, 4294967024  ;;  %s647_s16 = scalar_lea.sflag [#allocation10], %s629_s2 }
 0x122   : > { %3541 = dma.done.wait (%p4582_p6), %s647_s16, 32  }
 0x123   : > { %3543 = vsyncadd (%p4582_p6), %s647_s16, 4294967264  ;;  %s663_s0 = scalar_lea.sflag [#allocation13], %s629_s2  ;;  %s4095_s3 = scalar_lea.vmem [#allocation12], %s2714_s18 }
 0x124   : > { %3545 = dma.done.wait (%p4582_p6), %s663_s0, 272  }
 0x125   : > { %3547 = vsyncadd (%p4582_p6), %s663_s0, 4294967024  ;;  %s680_s20 = scalar_lea.sflag [#allocation16], %s4072_s24 }
 0x126   : > { %3549 = dma.done.wait (%p4582_p6), %s680_s20, 16  }
 0x127   : > { %3551 = vsyncadd (%p4582_p6), %s680_s20, 4294967280  ;;  %s4524_s9 = sand.u32 1, %s3562_s26   ;;  %s2717_s13 = sshll.u32 %s3586_s15, 1 }
 0x128   : > { %s2716_s23 = sshll.u32 %s4524_s9, 5  ;;  %p777_p10 = scmp.lt.s32.totalorder %s2717_s13, 3 }
 0x129   : > { %p783_p0 = scmp.lt.s32.totalorder %s3582_s14, 1  ;;  %s4583_s4 = sld [smem:[#allocation36_spill]] }
 0x12a   : > { %s4624_s13 = smov (!%p777_p10, %s2717_s13), 3  ;;  %s4584_s16 = sld [smem:[#allocation37_spill]] }
 0x12b   : > { %s4114_s17 = scalar_select %p783_p0, %s3582_s14, 1 }
 0x12c   : > { %s2775_s21 = sshll.u32 %s4624_s13, 4  ;;  %s4585_s5 = sld [smem:[#allocation38_spill]] }
 0x12d   : > { %s2776_s19 = sshll.u32 %s4114_s17, 4  ;;  %s4586_s25 = sld [smem:[#allocation39_spill]] }
 0x12e   : > { %s2777_s8 = sshll.u32 %s4114_s17, 5  ;;  %s4587_s12 = sld [smem:[#allocation47_spill]] }
 0x12f   : > { %s781_s2 = scalar_lea.vmem %s4583_s4, %s2775_s21  ;;  %s4139_s21 = scalar_lea.vmem [#allocation17], %s2716_s23 }
 0x130   : > { %s785_s0 = scalar_lea.vmem %s4584_s16, %s4114_s17  ;;  %p2724_p1 = scmp.ne.s32.totalorder %s3582_s14, 0 }
 0x131   : > { %v805_v0 = vld [vmem:[%s781_s2] sm:$0xff] (!%p2724_p1)  ;;  %vm809_vm0 = vcmask (!%p2724_p1), 261120   ;;  %v806_v1 = vld [vmem:[%s781_s2 + $0x8] sm:$0xff] (!%p2724_p1)  ;;  %v807_v2 = vld [vmem:[%s781_s2 + $0x10] sm:$0xff] (!%p2724_p1) }
 0x132   : > { %s788_s30 = scalar_lea.vmem %s4585_s5, %s4114_s17  ;;  %804 = sbr.rel (%p2724_p1) target bundleno = 313 (0x139), region = 108  ;;  %810 = vst.msk [vmem:[%s4139_s21] sm:$0xff] (!%p2724_p1), %vm809_vm0, %v805_v0  ;;  %811 = vst.msk [vmem:[%s4139_s21 + $0x8] sm:$0xff] (!%p2724_p1), %vm809_vm0, %v806_v1  ;;  %v808_v3 = vld [vmem:[%s781_s2 + $0x18] sm:$0xff] (!%p2724_p1) }
 0x133   : > { %s4131_s6 = scalar_lea.vmem %s4586_s25, %s2776_s19  ;;  %812 = vst.msk [vmem:[%s4139_s21 + $0x10] sm:$0xff] (!%p2724_p1), %vm809_vm0, %v807_v2  ;;  %813 = vst.msk [vmem:[%s4139_s21 + $0x18] sm:$0xff] (!%p2724_p1), %vm809_vm0, %v808_v3 }
 0x134   : > { %s4137_s27 = scalar_lea.vmem %s4587_s12, %s2777_s8 }
 0x139 PF: > { %v814_v4 = vld [vmem:[%s4139_s21] sm:$0xff]  ;;  %vm818_vm1 = vcmask 261120   ;;  %v815_v6 = vld [vmem:[%s4139_s21 + $0x8] sm:$0xff]  ;;  %v3118_v32 = vld [vmem:[%s4131_s6] sm:$0xff]   ;;  %v3610_v2 = vmov 0.0   ;;  %vm3611_vm2 = vmmov 0  }
 0x13a   : > { %v816_v5 = vld [vmem:[%s4139_s21 + $0x10] sm:$0xff]  ;;  %v819_v7 = vsel %vm818_vm1, %v814_v4, 0.0  ;;  %v817_v9 = vld [vmem:[%s4139_s21 + $0x18] sm:$0xff]  ;;  %v822_v10 = vsel %vm818_vm1, %v815_v6, 0.0  ;;  %2830 = vmatprep.subr.bf16.mxu0 %v3118_v32  ;;  %2838 = vmatprep.subr.bf16.mxu1 %v3610_v2  ;;  %s4590_s1 = scalar_lea.vmem [#allocation3], %s4072_s24  ;;  %s3612_s22 = smov 96  }
 0x13b   : > { %v825_v8 = vsel %vm818_vm1, %v816_v5, 0.0  ;;  %820 = vadd.xlane.f32.xlu0 %v819_v7  ;;  %v828_v11 = vsel %vm818_vm1, %v817_v9, 0.0  ;;  %v3119_v33 = vld [vmem:[%s4131_s6 + $0x8] sm:$0xff]   ;;  %2831 = vmatpush3.bf16.msra.mxu0 %v3118_v32  ;;  %v2725_v48 = vld [vmem:[%s785_s0] ss:$0 sm:$0xff]  ;;  %vm979_vm3 = vcmask 64512  }
 0x13c   : > { %826 = vadd.xlane.f32.xlu1 %v825_v8  ;;  %2832 = vmatprep.subr.bf16.mxu0 %v3119_v33  ;;  %v2726_v54 = vld [vmem:[%s788_s30] ss:$0 sm:$0xff]  ;;  %vm1081_vm4 = vcmask 130048   ;;  %s3613_s19 = smov 64   ;;  %s3614_s30 = smov 88   ;;  %vm1488_vm5 = vcmask 130112  }
 0x13d   : > { %2840 = vmatprep.mubr.msk.bf16.mxu1 %vm3611_vm2, %v3610_v2  ;;  %s3615_s5 = smov 120   ;;  %s3616_s9 = smov 56   ;;  %vm1755_vm6 = vcmask 195712   ;;  %vm2022_vm7 = vcmask 261312   ;;  %vm2346_vm8 = vcmask 523264  }
 0x13e   : > { %s3617_s23 = smov 80   ;;  %s3618_s17 = smov 112  }
 0x13f   : > { %823 = vadd.xlane.f32.xlu0 %v822_v10  ;;  %2833 = vmatpush3.bf16.msra.mxu0 %v3119_v33  ;;  %s3619_s7 = smov 48   ;;  %s3620_s4 = smov 72  }
 0x140   : > { %829 = vadd.xlane.f32.xlu1 %v828_v11  ;;  %2844 = vmatprep.subr.bf16.mxu0 %v3610_v2  ;;  %s3621_s2 = smov 104   ;;  %s3622_s18 = smov 40  }
 0x141   : > { %s3623_s11 = smov 8   ;;  %s3624_s16 = smov 16  }
 0x142   : > { %s3625_s0 = smov 24   ;;  %s4593_s20 = scalar_lea.vmem [#allocation11], %s4072_s24 }
 0x143   : > { %s4594_s13 = scalar_lea.vmem [#allocation14], %s4072_s24  ;;  %s2779_s6 = sshll.u32 %s3586_s15, 9 }
 0x144   : > { %s4596_s8 = sld [smem:[#allocation34_spill]]  ;;  %s2425_s10 = sshll.u32 %s4139_s21, 4  ;;  %s4417_s10 = int_to_ptr.vmem [resolvable:$true] %s2425_s10 }
 0x145   : > { %s4597_s14 = sld [smem:[#allocation49_spill]]  ;;  %s4599_s15 = sand.u32 1, %s3562_s26  }
 0x14a   : > { %p4600_p5 = scmp.ne.s32.totalorder %s4596_s8, 0 }
 0x14b   : > { %s4412_s25 = scalar_lea.hbm %s4597_s14, %s2779_s6 }
 0x1c8   : > { %v821_v12 = vpop.xlane.xlu0 %820 }
 0x1c9   : > { %v827_v13 = vpop.xlane.xlu1 %826  ;;  %v832_v14 = vmul.f32 0.03125, %v821_v12 }
 0x1ca   : > { %v834_v15 = vmul.f32 0.03125, %v827_v13 }
 0x1cb   : > { %v836_v16 = vsub.f32 %v814_v4, %v832_v14  ;;  %v2727_v4 = vld [vmem:[%s4590_s1] ss:$0 sm:$0xff]  ;;  %s4598_s1 = smov %s4597_s14 }
 0x1cc   : > { %v838_v17 = vsub.f32 %v816_v5, %v834_v15  ;;  %v824_v18 = vpop.xlane.xlu0 %823 }
 0x1cd   : > { %v830_v19 = vpop.xlane.xlu1 %829  ;;  %v833_v20 = vmul.f32 0.03125, %v824_v18  ;;  %v840_v22 = vmul.f32 %v836_v16, %v836_v16 }
 0x1ce   : > { %v835_v21 = vmul.f32 0.03125, %v830_v19  ;;  %v842_v23 = vmul.f32 %v838_v17, %v838_v17 }
 0x1cf   : > { %v837_v24 = vsub.f32 %v815_v6, %v833_v20  ;;  %v844_v26 = vsel %vm818_vm1, %v840_v22, 0.0 }
 0x1d0   : > { %v839_v25 = vsub.f32 %v817_v9, %v835_v21  ;;  %845 = vadd.xlane.f32.xlu0 %v844_v26  ;;  %v850_v27 = vsel %vm818_vm1, %v842_v23, 0.0 }
 0x1d1   : > { %v841_v28 = vmul.f32 %v837_v24, %v837_v24 }
 0x1d2   : > { %v843_v29 = vmul.f32 %v839_v25, %v839_v25 }
 0x1d3   : > { %v847_v30 = vsel %vm818_vm1, %v841_v28, 0.0 }
 0x1d4   : > { %851 = vadd.xlane.f32.xlu0 %v850_v27  ;;  %848 = vadd.xlane.f32.xlu1 %v847_v30  ;;  %v853_v31 = vsel %vm818_vm1, %v843_v29, 0.0 }
 0x1d8   : > { %854 = vadd.xlane.f32.xlu1 %v853_v31 }
 0x25d   : > { %v846_v34 = vpop.xlane.xlu0 %845 }
 0x25e   : > { %v856_v35 = vmul.f32 0.03125, %v846_v34 }
 0x260   : > { %v860_v36 = vadd.f32 1e-05, %v856_v35 }
 0x261   : > { %v849_v37 = vpop.xlane.xlu1 %848  ;;  %v852_v38 = vpop.xlane.xlu0 %851 }
 0x262   : > { %3128 = vrsqrt.f32 %v860_v36  ;;  %v857_v39 = vmul.f32 0.03125, %v849_v37  ;;  %v858_v40 = vmul.f32 0.03125, %v852_v38 }
 0x264   : > { %v861_v41 = vadd.f32 1e-05, %v857_v39  ;;  %v862_v42 = vadd.f32 1e-05, %v858_v40 }
 0x265   : > { %v855_v43 = vpop.xlane.xlu1 %854 }
 0x266   : > { %3130 = vrsqrt.f32 %v861_v41  ;;  %v859_v44 = vmul.f32 0.03125, %v855_v43 }
 0x267   : > { %3132 = vrsqrt.f32 %v862_v42 }
 0x268   : > { %v863_v45 = vadd.f32 1e-05, %v859_v44 }
 0x26a   : > { %3134 = vrsqrt.f32 %v863_v45 }
 0x26c   : > { %v3129_v46 = vpop.eup %3128 }
 0x26d   : > { %v868_v47 = vmul.f32 %v3129_v46, %v836_v16 }
 0x26f   : > { %v879_v52 = vmul.f32 %v2725_v48, %v868_v47 }
 0x270   : > { %v3131_v49 = vpop.eup %3130 }
 0x271   : > { %v3133_v50 = vpop.eup %3132  ;;  %v869_v51 = vmul.f32 %v3131_v49, %v837_v24  ;;  %v890_v58 = vadd.f32 %v2726_v54, %v879_v52 }
 0x272   : > { %v870_v53 = vmul.f32 %v3133_v50, %v838_v17 }
 0x273   : > { %v880_v55 = vmul.f32 %v2725_v48, %v869_v51 }
 0x274   : > { %v3135_v56 = vpop.eup %3134  ;;  %v881_v60 = vmul.f32 %v2725_v48, %v870_v53 }
 0x275   : > { %v871_v57 = vmul.f32 %v3135_v56, %v839_v25  ;;  %v891_v59 = vadd.f32 %v2726_v54, %v880_v55 }
 0x276   : > { %v892_v63 = vadd.f32 %v2726_v54, %v881_v60 }
 0x277   : > { %v894_v61 = vpack.c.bf16 %v891_v59, %v890_v58  ;;  %v882_v62 = vmul.f32 %v2725_v48, %v871_v57 }
 0x279   : > { %2834 = vmatprep.mubr.msk.bf16.mxu0 %vm818_vm1, %v894_v61  ;;  %v893_v0 = vadd.f32 %v2726_v54, %v882_v62 }
 0x27b   : > { %v895_v1 = vpack.c.bf16 %v893_v0, %v892_v63 }
 0x27d   : > { %2835 = vmatmul.mubr.msk.bf16.vlgmr.msra.gmra.mrb[0].mxu0 %vm818_vm1, %v895_v1 }
 0x27e   : > { %2846 = vmatprep.mubr.msk.bf16.mxu0 %vm3611_vm2, %v3610_v2 }
 0x350   : > { %v2836_v3 = vpop.f32.mrb[0].mxu0 }
 0x351   : > { %v959_v5 = vpop.f32.mrb[1].mxu0  ;;  %v968_v7 = vadd.f32 %v2836_v3, %v2727_v4 }
 0x352   : > { %v2837_v6 = vpop.f32.mrb[2].mxu0  ;;  %v960_v10 = vadd.f32 %v2727_v4, %v959_v5 }
 0x353   : > { %v971_v8 = vadd.f32 %v2837_v6, %v2727_v4  ;;  %v962_v9 = vpop.f32.mrb[3].mxu0 }
 0x354   : > { %v963_v11 = vadd.f32 %v2727_v4, %v962_v9 }
 0x355   : > { %v4180_v12 = vpack.c.bf16 %v971_v8, %v968_v7 }
 0x356   : > { %v4182_v13 = vpack.c.bf16 %v963_v11, %v960_v10 }
 0x357   : > { %1028 = vrot.lane.b32.xlu1 %v4180_v12, %s3612_s22 }
 0x358   : > { %977 = vrot.lane.b32.xlu0 %v4182_v13, %s3612_s22  ;;  %s4425_s22 = scalar_lea.sflag [#allocation5], %s4599_s15 }
 0x3c9   : > { %v1029_v14 = vpop.permute.xlu1 %1028 }
 0x3ca   : > { %v1034_v15 = vsel %vm979_vm3, %v1029_v14, 0  ;;  %v978_v16 = vpop.permute.xlu0 %977 }
 0x3cb   : > { %2845 = vmatpush3.bf16.xpose.msra.mxu0 %v1034_v15  ;;  %v984_v17 = vsel %vm979_vm3, %v978_v16, 0 }
 0x3cc   : > { %2839 = vmatpush3.bf16.xpose.msra.mxu1 %v984_v17  ;;  %2856 = vmatprep.subr.bf16.mxu0 %v3610_v2 }
 0x3cd   : > { %2850 = vmatprep.subr.bf16.mxu1 %v3610_v2 }
 0x3d2   : > { %2847 = vmatmul.mubr.msk.bf16.vlgmr.msra.gmra.mrb[4].mxu0 %vm979_vm3, %v4180_v12 }
 0x3d3   : > { %2841 = vmatmul.mubr.msk.bf16.vlgmr.msra.gmra.mrb[0].mxu1 %vm979_vm3, %v4182_v13  ;;  %2858 = vmatprep.mubr.msk.bf16.mxu0 %vm3611_vm2, %v3610_v2 }
 0x3d4   : > { %2852 = vmatprep.mubr.msk.bf16.mxu1 %vm3611_vm2, %v3610_v2 }
 0x4a5   : > { %v1070_v18 = vpop.f32.mrb[4].mxu0 }
 0x4a6   : > { %v1020_v19 = vpop.f32.mrb[0].mxu1  ;;  %v2848_v20 = vpop.f32.mrb[5].mxu0  ;;  %v1079_v30 = vmul.f32 0.35355338, %v1070_v18 }
 0x4a7   : > { %v1077_v21 = vmul.f32 0.35355338, %v1020_v19  ;;  %v2842_v22 = vpop.f32.mrb[1].mxu1  ;;  %v1073_v23 = vpop.f32.mrb[6].mxu0 }
 0x4a8   : > { %v1023_v24 = vpop.f32.mrb[2].mxu1  ;;  %v2849_v25 = vpop.f32.mrb[7].mxu0  ;;  %v1080_v26 = vmul.f32 0.35355338, %v1073_v23  ;;  %v1088_v33 = vsel %vm1081_vm4, %v1079_v30, -inf }
 0x4a9   : > { %v1078_v27 = vmul.f32 0.35355338, %v1023_v24  ;;  %v2843_v28 = vpop.f32.mrb[3].mxu1  ;;  %v1082_v29 = vsel %vm1081_vm4, %v1077_v21, -inf }
 0x4aa   : > { %1083 = vmax.xlane.f32.xlu1 %v1082_v29  ;;  %v1091_v32 = vsel %vm1081_vm4, %v1080_v26, -inf }
 0x4ab   : > { %v1085_v31 = vsel %vm1081_vm4, %v1078_v27, -inf }
 0x4ac   : > { %1086 = vmax.xlane.f32.xlu0 %v1085_v31 }
 0x4ae   : > { %1092 = vmax.xlane.f32.xlu1 %v1091_v32 }
 0x4b0   : > { %1089 = vmax.xlane.f32.xlu0 %v1088_v33 }
 0x4bf   : > { %1175 = vrot.lane.b32.xlu1 %v4180_v12, %s3613_s19 }
 0x4c3   : > { %1228 = vrot.lane.b32.xlu1 %v4182_v13, %s3614_s30 }
 0x537   : > { %v1084_v34 = vpop.xlane.xlu1 %1083 }
 0x538   : > { %v1094_v38 = vsub.f32 %v1077_v21, %v1084_v34 }
 0x539   : > { %v1087_v35 = vpop.xlane.xlu0 %1086 }
 0x53a   : > { %v1095_v36 = vsub.f32 %v1078_v27, %v1087_v35  ;;  %v1098_v45 = vmul.f32 1.442695, %v1094_v38 }
 0x53b   : > { %v1093_v37 = vpop.xlane.xlu1 %1092 }
 0x53c   : > { %v1097_v39 = vsub.f32 %v1080_v26, %v1093_v37  ;;  %v1100_v40 = vmul.f32 1.442695, %v1095_v36 }
 0x53d   : > { %v1090_v41 = vpop.xlane.xlu0 %1089 }
 0x53e   : > { %v1104_v42 = vmul.f32 1.442695, %v1097_v39  ;;  %v1096_v43 = vsub.f32 %v1079_v30, %v1090_v41 }
 0x53f   : > { %v1176_v44 = vpop.permute.xlu1 %1175 }
 0x540   : > { %3136 = vpow2.f32 %v1104_v42  ;;  %v1102_v46 = vmul.f32 1.442695, %v1096_v43  ;;  %2857 = vmatpush3.bf16.msra.mxu0 %v1176_v44 }
 0x541   : > { %3138 = vpow2.f32 %v1100_v40  ;;  %2868 = vmatprep.subr.bf16.mxu0 %v3610_v2 }
 0x542   : > { %3140 = vpow2.f32 %v1102_v46 }
 0x543   : > { %3142 = vpow2.f32 %v1098_v45  ;;  %v1229_v55 = vpop.permute.xlu1 %1228 }
 0x544   : > { %v1234_v10 = vsel %vm979_vm3, %v1229_v55, 0 }
 0x54a   : > { %v3137_v47 = vpop.eup %3136 }
 0x54b   : > { %v3139_v48 = vpop.eup %3138  ;;  %v1115_v49 = vsel %vm1081_vm4, %v3137_v47, 0.0 }
 0x54c   : > { %v3141_v50 = vpop.eup %3140  ;;  %1116 = vadd.xlane.f32.xlu1 %v1115_v49  ;;  %v1109_v53 = vsel %vm1081_vm4, %v3139_v48, 0.0 }
 0x54d   : > { %v1112_v51 = vsel %vm1081_vm4, %v3141_v50, 0.0  ;;  %v3143_v52 = vpop.eup %3142 }
 0x54e   : > { %1113 = vadd.xlane.f32.xlu0 %v1112_v51  ;;  %v1106_v54 = vsel %vm1081_vm4, %v3143_v52, 0.0 }
 0x550   : > { %1110 = vadd.xlane.f32.xlu1 %v1109_v53 }
 0x552   : > { %1107 = vadd.xlane.f32.xlu0 %v1106_v54 }
 0x561   : > { %1279 = vrot.lane.b32.xlu1 %v4180_v12, %s3614_s30  ;;  %s3626_s30 = smov [#allocation17]  }
 0x565   : > { %1277 = vrot.lane.b32.xlu1 %v4180_v12, %s3615_s5 }
 0x568   : > { %1128 = vrot.lane.b32.xlu0 %v4182_v13, %s3613_s19  ;;  %s3460_s19 = scalar_lea.vmem %s4417_s10, 512 }
 0x569   : > { %p3461_p9 = scmp.ne.s32.totalorder %s4417_s10, %s3460_s19 }
 0x56b   : > { %p3462_p2 = pnand %p3461_p9, %p4600_p5 }
 0x56c   : > { %1226 = vrot.lane.b32.xlu0 %v4182_v13, %s3615_s5  ;;  %s3464_s5 = sshll.u32 %s3626_s30, 4  ;;  %s3465_s5 = int_to_ptr.vmem [resolvable:$false] %s3464_s5 }
 0x56d   : > { %p3463_p4 = pneg %p3462_p2  ;;  %p3467_p8 = scmp.lt.s32.totalorder %s4417_s10, %s3465_s5 }
 0x5d9   : > { %v1117_v56 = vpop.xlane.xlu1 %1116 }
 0x5da   : > { %3144 = vrcp.f32 %v1117_v56 }
 0x5db   : > { %v1114_v57 = vpop.xlane.xlu0 %1113 }
 0x5dc   : > { %3146 = vrcp.f32 %v1114_v57 }
 0x5dd   : > { %v1111_v58 = vpop.xlane.xlu1 %1110 }
 0x5de   : > { %3148 = vrcp.f32 %v1111_v58 }
 0x5df   : > { %v1108_v59 = vpop.xlane.xlu0 %1107 }
 0x5e0   : > { %3150 = vrcp.f32 %v1108_v59 }
 0x5e1   : > { %v1280_v3 = vpop.permute.xlu1 %1279 }
 0x5e2   : > { %v1285_v8 = vsel %vm979_vm3, %v1280_v3, 0 }
 0x5e3   : > { %v1129_v60 = vpop.permute.xlu0 %1128 }
 0x5e4   : > { %v3145_v61 = vpop.eup %3144  ;;  %2851 = vmatpush3.bf16.msra.mxu1 %v1129_v60 }
 0x5e5   : > { %2862 = vmatprep.subr.bf16.mxu1 %v3610_v2  ;;  %v1125_v63 = vmul.f32 %v3145_v61, %v3137_v47  ;;  %v1278_v11 = vpop.permute.xlu1 %1277 }
 0x5e6   : > { %v3147_v62 = vpop.eup %3146 }
 0x5e7   : > { %v1124_v0 = vmul.f32 %v3147_v62, %v3141_v50  ;;  %v1227_v14 = vpop.permute.xlu0 %1226 }
 0x5e8   : > { %v3149_v1 = vpop.eup %3148 }
 0x5e9   : > { %v1127_v4 = vpack.c.bf16 %v1125_v63, %v1124_v0  ;;  %v1123_v6 = vmul.f32 %v3149_v1, %v3139_v48 }
 0x5ea   : > { %v3151_v5 = vpop.eup %3150 }
 0x5eb   : > { %v1122_v7 = vmul.f32 %v3151_v5, %v3143_v52  ;;  %2859 = vmatmul.mubr.msk.bf16.vlgmr.msra.gmra.mrb[8].mxu0 %vm1081_vm4, %v1127_v4 }
 0x5ec   : > { %2869 = vmatpush3.bf16.xpose.msra.mxu0 %v1285_v8  ;;  %2870 = vmatprep.mubr.msk.bf16.mxu0 %vm3611_vm2, %v3610_v2 }
 0x5ed   : > { %v1126_v9 = vpack.c.bf16 %v1123_v6, %v1122_v7  ;;  %2880 = vmatprep.subr.bf16.mxu0 %v3610_v2 }
 0x5ef   : > { %2853 = vmatmul.mubr.msk.bf16.vlgmr.msra.gmra.mrb[4].mxu1 %vm1081_vm4, %v1126_v9 }
 0x5f0   : > { %2863 = vmatpush3.bf16.xpose.msra.mxu1 %v1234_v10  ;;  %2864 = vmatprep.mubr.msk.bf16.mxu1 %vm3611_vm2, %v3610_v2 }
 0x5f1   : > { %2874 = vmatprep.subr.bf16.mxu1 %v3610_v2 }
 0x5f3   : > { %2871 = vmatmul.mubr.msk.bf16.vlgmr.msra.gmra.mrb[12].mxu0 %vm979_vm3, %v1278_v11 }
 0x5f4   : > { %2882 = vmatprep.mubr.msk.bf16.mxu0 %vm3611_vm2, %v3610_v2 }
 0x5f7   : > { %2865 = vmatmul.mubr.msk.bf16.vlgmr.msra.gmra.mrb[8].mxu1 %vm979_vm3, %v1227_v14 }
 0x5f8   : > { %2876 = vmatprep.mubr.msk.bf16.mxu1 %vm3611_vm2, %v3610_v2 }
 0x6be   : > { %v1215_v15 = vpop.f32.mrb[8].mxu0 }
 0x6bf   : > { %1224 = vst.msk [vmem:[#allocation2 + $0x10] sm:$0xff] %vm979_vm3, %v1215_v15  ;;  %v2860_v16 = vpop.f32.mrb[9].mxu0 }
 0x6c0   : > { %v1218_v17 = vpop.f32.mrb[10].mxu0 }
 0x6c1   : > { %1225 = vst.msk [vmem:[#allocation2 + $0x18] sm:$0xff] %vm979_vm3, %v1218_v17  ;;  %v2861_v18 = vpop.f32.mrb[11].mxu0 }
 0x6c2   : > { %v1168_v19 = vpop.f32.mrb[4].mxu1 }
 0x6c3   : > { %1222 = vst.msk [vmem:[#allocation2] sm:$0xff] %vm979_vm3, %v1168_v19  ;;  %v2854_v20 = vpop.f32.mrb[5].mxu1 }
 0x6c4   : > { %v1171_v21 = vpop.f32.mrb[6].mxu1 }
 0x6c5   : > { %1223 = vst.msk [vmem:[#allocation2 + $0x8] sm:$0xff] %vm979_vm3, %v1171_v21  ;;  %v2855_v22 = vpop.f32.mrb[7].mxu1 }
 0x6c6   : > { %v1321_v23 = vpop.f32.mrb[12].mxu0 }
 0x6c7   : > { %v2872_v24 = vpop.f32.mrb[13].mxu0  ;;  %v1330_v31 = vmul.f32 0.35355338, %v1321_v23 }
 0x6c8   : > { %v1324_v25 = vpop.f32.mrb[14].mxu0 }
 0x6c9   : > { %v2873_v26 = vpop.f32.mrb[15].mxu0  ;;  %v1331_v36 = vmul.f32 0.35355338, %v1324_v25  ;;  %v1338_v37 = vsel %vm1081_vm4, %v1330_v31, -inf }
 0x6ca   : > { %v1270_v27 = vpop.f32.mrb[8].mxu1 }
 0x6cb   : > { %v1328_v28 = vmul.f32 0.35355338, %v1270_v27  ;;  %v2866_v29 = vpop.f32.mrb[9].mxu1  ;;  %v1341_v38 = vsel %vm1081_vm4, %v1331_v36, -inf }
 0x6cc   : > { %v1273_v30 = vpop.f32.mrb[10].mxu1 }
 0x6cd   : > { %v1329_v32 = vmul.f32 0.35355338, %v1273_v30  ;;  %v2867_v33 = vpop.f32.mrb[11].mxu1  ;;  %v1332_v34 = vsel %vm1081_vm4, %v1328_v28, -inf }
 0x6ce   : > { %1333 = vmax.xlane.f32.xlu0 %v1332_v34 }
 0x6cf   : > { %v1335_v35 = vsel %vm1081_vm4, %v1329_v32, -inf }
 0x6d0   : > { %1336 = vmax.xlane.f32.xlu1 %v1335_v35 }
 0x6d2   : > { %1339 = vmax.xlane.f32.xlu0 %v1338_v37 }
 0x6d6   : > { %1342 = vmax.xlane.f32.xlu0 %v1341_v38 }
 0x6e1   : > { %1425 = vrot.lane.b32.xlu1 %v4180_v12, %s3616_s9 }
 0x6e5   : > { %1495 = vrot.lane.b32.xlu1 %v4182_v13, %s3617_s23 }
 0x75b   : > { %v1334_v39 = vpop.xlane.xlu0 %1333 }
 0x75c   : > { %v1344_v41 = vsub.f32 %v1328_v28, %v1334_v39 }
 0x75d   : > { %v1337_v40 = vpop.xlane.xlu1 %1336 }
 0x75e   : > { %v1348_v45 = vmul.f32 1.442695, %v1344_v41  ;;  %v1345_v46 = vsub.f32 %v1329_v32, %v1337_v40 }
 0x75f   : > { %v1340_v42 = vpop.xlane.xlu0 %1339 }
 0x760   : > { %v1346_v43 = vsub.f32 %v1330_v31, %v1340_v42  ;;  %v1350_v50 = vmul.f32 1.442695, %v1345_v46 }
 0x761   : > { %v1426_v44 = vpop.permute.xlu1 %1425 }
 0x762   : > { %v1352_v47 = vmul.f32 1.442695, %v1346_v43  ;;  %2881 = vmatpush3.bf16.msra.mxu0 %v1426_v44 }
 0x763   : > { %v1343_v48 = vpop.xlane.xlu0 %1342  ;;  %2892 = vmatprep.subr.bf16.mxu0 %v3610_v2 }
 0x764   : > { %3152 = vpow2.f32 %v1352_v47  ;;  %v1347_v49 = vsub.f32 %v1331_v36, %v1343_v48 }
 0x765   : > { %3154 = vpow2.f32 %v1348_v45  ;;  %v1496_v60 = vpop.permute.xlu1 %1495 }
 0x766   : > { %v1354_v51 = vmul.f32 1.442695, %v1347_v49  ;;  %v1501_v17 = vsel %vm979_vm3, %v1496_v60, 0 }
 0x768   : > { %3156 = vpow2.f32 %v1354_v51 }
 0x769   : > { %3158 = vpow2.f32 %v1350_v50 }
 0x76e   : > { %v3153_v52 = vpop.eup %3152 }
 0x76f   : > { %v1362_v53 = vsel %vm1081_vm4, %v3153_v52, 0.0  ;;  %v3155_v54 = vpop.eup %3154 }
 0x770   : > { %1363 = vadd.xlane.f32.xlu0 %v1362_v53  ;;  %v1356_v56 = vsel %vm1081_vm4, %v3155_v54, 0.0 }
 0x772   : > { %v3157_v55 = vpop.eup %3156 }
 0x773   : > { %v1365_v57 = vsel %vm1081_vm4, %v3157_v55, 0.0  ;;  %v3159_v58 = vpop.eup %3158 }
 0x774   : > { %1357 = vadd.xlane.f32.xlu0 %v1356_v56  ;;  %1366 = vadd.xlane.f32.xlu1 %v1365_v57  ;;  %v1359_v59 = vsel %vm1081_vm4, %v3159_v58, 0.0 }
 0x778   : > { %1360 = vadd.xlane.f32.xlu1 %v1359_v59 }
 0x789   : > { %1546 = vrot.lane.b32.xlu1 %v4180_v12, %s3617_s23 }
 0x78a   : > { %1378 = vrot.lane.b32.xlu0 %v4182_v13, %s3616_s9  ;;  %s3466_s9 = scalar_lea.vmem %s3465_s5, 1024 }
 0x78b   : > { %p3468_p7 = scmp.lt.s32.totalorder %s3466_s9, %s3460_s19 }
 0x78d   : > { %1544 = vrot.lane.b32.xlu1 %v4180_v12, %s3618_s17  ;;  %p3469_p13 = por %p3468_p7, %p3467_p8 }
 0x78e   : > { %1493 = vrot.lane.b32.xlu0 %v4182_v13, %s3618_s17 }
 0x78f   : > { %p3470_p3 = pnand %p3469_p13, %p3463_p4 }
 0x7fd   : > { %v1364_v61 = vpop.xlane.xlu0 %1363 }
 0x7fe   : > { %3160 = vrcp.f32 %v1364_v61 }
 0x801   : > { %v1358_v62 = vpop.xlane.xlu0 %1357  ;;  %v1367_v63 = vpop.xlane.xlu1 %1366 }
 0x802   : > { %3162 = vrcp.f32 %v1367_v63 }
 0x803   : > { %3164 = vrcp.f32 %v1358_v62 }
 0x805   : > { %v1379_v0 = vpop.permute.xlu0 %1378  ;;  %v1361_v1 = vpop.xlane.xlu1 %1360 }
 0x806   : > { %3166 = vrcp.f32 %v1361_v1  ;;  %2875 = vmatpush3.bf16.msra.mxu1 %v1379_v0 }
 0x807   : > { %2886 = vmatprep.subr.bf16.mxu1 %v3610_v2 }
 0x808   : > { %v3161_v3 = vpop.eup %3160 }
 0x809   : > { %v1374_v6 = vmul.f32 %v3161_v3, %v3153_v52  ;;  %v1547_v8 = vpop.permute.xlu1 %1546  ;;  %v1494_v19 = vpop.permute.xlu0 %1493 }
 0x80a   : > { %v1552_v15 = vsel %vm979_vm3, %v1547_v8, 0 }
 0x80c   : > { %v3163_v4 = vpop.eup %3162 }
 0x80d   : > { %v3165_v5 = vpop.eup %3164  ;;  %v1375_v7 = vmul.f32 %v3163_v4, %v3157_v55  ;;  %v1545_v18 = vpop.permute.xlu1 %1544 }
 0x80e   : > { %v1372_v11 = vmul.f32 %v3165_v5, %v3155_v54 }
 0x80f   : > { %v1377_v10 = vpack.c.bf16 %v1375_v7, %v1374_v6 }
 0x810   : > { %v3167_v9 = vpop.eup %3166 }
 0x811   : > { %v1373_v14 = vmul.f32 %v3167_v9, %v3159_v58  ;;  %2883 = vmatmul.mubr.msk.bf16.vlgmr.msra.gmra.mrb[16].mxu0 %vm1081_vm4, %v1377_v10 }
 0x812   : > { %2893 = vmatpush3.bf16.xpose.msra.mxu0 %v1552_v15  ;;  %2894 = vmatprep.mubr.msk.bf16.mxu0 %vm3611_vm2, %v3610_v2 }
 0x813   : > { %v1376_v16 = vpack.c.bf16 %v1373_v14, %v1372_v11  ;;  %2904 = vmatprep.subr.bf16.mxu0 %v3610_v2 }
 0x815   : > { %2877 = vmatmul.mubr.msk.bf16.vlgmr.msra.gmra.mrb[12].mxu1 %vm1081_vm4, %v1376_v16 }
 0x816   : > { %2887 = vmatpush3.bf16.xpose.msra.mxu1 %v1501_v17  ;;  %2888 = vmatprep.mubr.msk.bf16.mxu1 %vm3611_vm2, %v3610_v2 }
 0x817   : > { %2898 = vmatprep.subr.bf16.mxu1 %v3610_v2 }
 0x819   : > { %2895 = vmatmul.mubr.msk.bf16.vlgmr.msra.gmra.mrb[20].mxu0 %vm979_vm3, %v1545_v18 }
 0x81a   : > { %2906 = vmatprep.mubr.msk.bf16.mxu0 %vm3611_vm2, %v3610_v2 }
 0x81d   : > { %2889 = vmatmul.mubr.msk.bf16.vlgmr.msra.gmra.mrb[16].mxu1 %vm979_vm3, %v1494_v19 }
 0x81e   : > { %2900 = vmatprep.mubr.msk.bf16.mxu1 %vm3611_vm2, %v3610_v2 }
 0x8e4   : > { %v4274_v20 = vpop.f32.mrb[16].mxu0 }
 0x8e5   : > { %v2884_v21 = vpop.f32.mrb[17].mxu0 }
 0x8e6   : > { %v4276_v22 = vpop.f32.mrb[18].mxu0 }
 0x8e7   : > { %v2885_v23 = vpop.f32.mrb[19].mxu0 }
 0x8e8   : > { %v4278_v24 = vpop.f32.mrb[12].mxu1 }
 0x8e9   : > { %v2878_v25 = vpop.f32.mrb[13].mxu1 }
 0x8ea   : > { %v4280_v26 = vpop.f32.mrb[14].mxu1 }
 0x8eb   : > { %v2879_v27 = vpop.f32.mrb[15].mxu1 }
 0x8ec   : > { %v1588_v28 = vpop.f32.mrb[20].mxu0 }
 0x8ed   : > { %v2896_v29 = vpop.f32.mrb[21].mxu0  ;;  %v1597_v36 = vmul.f32 0.35355338, %v1588_v28 }
 0x8ee   : > { %v1591_v30 = vpop.f32.mrb[22].mxu0 }
 0x8ef   : > { %v2897_v31 = vpop.f32.mrb[23].mxu0  ;;  %v1598_v41 = vmul.f32 0.35355338, %v1591_v30  ;;  %v1605_v42 = vsel %vm1081_vm4, %v1597_v36, -inf }
 0x8f0   : > { %v1537_v32 = vpop.f32.mrb[16].mxu1 }
 0x8f1   : > { %v1595_v33 = vmul.f32 0.35355338, %v1537_v32  ;;  %v2890_v34 = vpop.f32.mrb[17].mxu1  ;;  %v1608_v43 = vsel %vm1081_vm4, %v1598_v41, -inf }
 0x8f2   : > { %v1540_v35 = vpop.f32.mrb[18].mxu1 }
 0x8f3   : > { %v1596_v37 = vmul.f32 0.35355338, %v1540_v35  ;;  %v2891_v38 = vpop.f32.mrb[19].mxu1  ;;  %v1599_v39 = vsel %vm1081_vm4, %v1595_v33, -inf }
 0x8f4   : > { %1600 = vmax.xlane.f32.xlu0 %v1599_v39 }
 0x8f5   : > { %v1602_v40 = vsel %vm1081_vm4, %v1596_v37, -inf }
 0x8f6   : > { %1603 = vmax.xlane.f32.xlu1 %v1602_v40 }
 0x8f8   : > { %1606 = vmax.xlane.f32.xlu0 %v1605_v42 }
 0x8fc   : > { %1609 = vmax.xlane.f32.xlu0 %v1608_v43 }
 0x907   : > { %1692 = vrot.lane.b32.xlu1 %v4180_v12, %s3619_s7 }
 0x90b   : > { %1762 = vrot.lane.b32.xlu1 %v4182_v13, %s3620_s4 }
 0x981   : > { %v1601_v44 = vpop.xlane.xlu0 %1600 }
 0x982   : > { %v1611_v46 = vsub.f32 %v1595_v33, %v1601_v44 }
 0x983   : > { %v1604_v45 = vpop.xlane.xlu1 %1603 }
 0x984   : > { %v1615_v50 = vmul.f32 1.442695, %v1611_v46  ;;  %v1612_v51 = vsub.f32 %v1596_v37, %v1604_v45 }
 0x985   : > { %v1607_v47 = vpop.xlane.xlu0 %1606 }
 0x986   : > { %v1613_v48 = vsub.f32 %v1597_v36, %v1607_v47  ;;  %v1617_v55 = vmul.f32 1.442695, %v1612_v51 }
 0x987   : > { %v1693_v49 = vpop.permute.xlu1 %1692 }
 0x988   : > { %v1619_v52 = vmul.f32 1.442695, %v1613_v48  ;;  %2905 = vmatpush3.bf16.msra.mxu0 %v1693_v49 }
 0x989   : > { %v1610_v53 = vpop.xlane.xlu0 %1609  ;;  %2916 = vmatprep.subr.bf16.mxu0 %v3610_v2 }
 0x98a   : > { %3168 = vpow2.f32 %v1619_v52  ;;  %v1614_v54 = vsub.f32 %v1598_v41, %v1610_v53 }
 0x98b   : > { %3170 = vpow2.f32 %v1615_v50  ;;  %v1763_v1 = vpop.permute.xlu1 %1762 }
 0x98c   : > { %v1621_v56 = vmul.f32 1.442695, %v1614_v54  ;;  %v1768_v25 = vsel %vm979_vm3, %v1763_v1, 0 }
 0x98e   : > { %3172 = vpow2.f32 %v1621_v56 }
 0x98f   : > { %3174 = vpow2.f32 %v1617_v55 }
 0x994   : > { %v3169_v57 = vpop.eup %3168 }
 0x995   : > { %v1629_v58 = vsel %vm1081_vm4, %v3169_v57, 0.0  ;;  %v3171_v59 = vpop.eup %3170 }
 0x996   : > { %1630 = vadd.xlane.f32.xlu0 %v1629_v58  ;;  %v1623_v61 = vsel %vm1081_vm4, %v3171_v59, 0.0 }
 0x998   : > { %v3173_v60 = vpop.eup %3172 }
 0x999   : > { %v1632_v62 = vsel %vm1081_vm4, %v3173_v60, 0.0  ;;  %v3175_v63 = vpop.eup %3174 }
 0x99a   : > { %1624 = vadd.xlane.f32.xlu0 %v1623_v61  ;;  %1633 = vadd.xlane.f32.xlu1 %v1632_v62  ;;  %v1626_v0 = vsel %vm1081_vm4, %v3175_v63, 0.0 }
 0x99e   : > { %1627 = vadd.xlane.f32.xlu1 %v1626_v0 }
 0x9af   : > { %1813 = vrot.lane.b32.xlu1 %v4180_v12, %s3620_s4 }
 0x9b0   : > { %1645 = vrot.lane.b32.xlu0 %v4182_v13, %s3619_s7 }
 0x9b3   : > { %1811 = vrot.lane.b32.xlu1 %v4180_v12, %s3621_s2 }
 0x9b4   : > { %1760 = vrot.lane.b32.xlu0 %v4182_v13, %s3621_s2 }
 0xa23   : > { %v1631_v3 = vpop.xlane.xlu0 %1630 }
 0xa24   : > { %3176 = vrcp.f32 %v1631_v3 }
 0xa27   : > { %v1625_v4 = vpop.xlane.xlu0 %1624  ;;  %v1634_v5 = vpop.xlane.xlu1 %1633 }
 0xa28   : > { %3178 = vrcp.f32 %v1634_v5 }
 0xa29   : > { %3180 = vrcp.f32 %v1625_v4 }
 0xa2b   : > { %v1646_v6 = vpop.permute.xlu0 %1645  ;;  %v1628_v7 = vpop.xlane.xlu1 %1627 }
 0xa2c   : > { %3182 = vrcp.f32 %v1628_v7  ;;  %2899 = vmatpush3.bf16.msra.mxu1 %v1646_v6 }
 0xa2d   : > { %2910 = vmatprep.subr.bf16.mxu1 %v3610_v2 }
 0xa2e   : > { %v3177_v8 = vpop.eup %3176 }
 0xa2f   : > { %v1641_v11 = vmul.f32 %v3177_v8, %v3169_v57  ;;  %v1814_v15 = vpop.permute.xlu1 %1813  ;;  %v1761_v28 = vpop.permute.xlu0 %1760 }
 0xa30   : > { %v1819_v21 = vsel %vm979_vm3, %v1814_v15, 0 }
 0xa32   : > { %v3179_v9 = vpop.eup %3178 }
 0xa33   : > { %v3181_v10 = vpop.eup %3180  ;;  %v1642_v14 = vmul.f32 %v3179_v9, %v3173_v60  ;;  %v1812_v27 = vpop.permute.xlu1 %1811 }
 0xa34   : > { %v1639_v18 = vmul.f32 %v3181_v10, %v3171_v59 }
 0xa35   : > { %v1644_v17 = vpack.c.bf16 %v1642_v14, %v1641_v11 }
 0xa36   : > { %v3183_v16 = vpop.eup %3182 }
 0xa37   : > { %v1640_v19 = vmul.f32 %v3183_v16, %v3175_v63  ;;  %2907 = vmatmul.mubr.msk.bf16.vlgmr.msra.gmra.mrb[24].mxu0 %vm1081_vm4, %v1644_v17 }
 0xa38   : > { %2917 = vmatpush3.bf16.xpose.msra.mxu0 %v1819_v21  ;;  %2918 = vmatprep.mubr.msk.bf16.mxu0 %vm3611_vm2, %v3610_v2 }
 0xa39   : > { %v1643_v23 = vpack.c.bf16 %v1640_v19, %v1639_v18  ;;  %2928 = vmatprep.subr.bf16.mxu0 %v3610_v2 }
 0xa3b   : > { %2901 = vmatmul.mubr.msk.bf16.vlgmr.msra.gmra.mrb[20].mxu1 %vm1081_vm4, %v1643_v23 }
 0xa3c   : > { %2911 = vmatpush3.bf16.xpose.msra.mxu1 %v1768_v25  ;;  %2912 = vmatprep.mubr.msk.bf16.mxu1 %vm3611_vm2, %v3610_v2 }
 0xa3d   : > { %2922 = vmatprep.subr.bf16.mxu1 %v3610_v2 }
 0xa3f   : > { %2919 = vmatmul.mubr.msk.bf16.vlgmr.msra.gmra.mrb[28].mxu0 %vm979_vm3, %v1812_v27 }
 0xa40   : > { %2930 = vmatprep.mubr.msk.bf16.mxu0 %vm3611_vm2, %v3610_v2 }
 0xa43   : > { %2913 = vmatmul.mubr.msk.bf16.vlgmr.msra.gmra.mrb[24].mxu1 %vm979_vm3, %v1761_v28 }
 0xa44   : > { %2924 = vmatprep.mubr.msk.bf16.mxu1 %vm3611_vm2, %v3610_v2 }
 0xb0a   : > { %v4318_v29 = vpop.f32.mrb[24].mxu0 }
 0xb0b   : > { %v2908_v30 = vpop.f32.mrb[25].mxu0 }
 0xb0c   : > { %v4320_v31 = vpop.f32.mrb[26].mxu0 }
 0xb0d   : > { %v2909_v32 = vpop.f32.mrb[27].mxu0 }
 0xb0e   : > { %v1685_v33 = vpop.f32.mrb[20].mxu1 }
 0xb0f   : > { %v2902_v34 = vpop.f32.mrb[21].mxu1 }
 0xb10   : > { %v1688_v35 = vpop.f32.mrb[22].mxu1  ;;  %v3121_v34 = vld [vmem:[%s4082_s28 + $0x8] sm:$0xff]  }
 0xb11   : > { %v2903_v36 = vpop.f32.mrb[23].mxu1 }
 0xb12   : > { %v1855_v37 = vpop.f32.mrb[28].mxu0 }
 0xb13   : > { %v2920_v38 = vpop.f32.mrb[29].mxu0  ;;  %v1864_v45 = vmul.f32 0.35355338, %v1855_v37 }
 0xb14   : > { %v1858_v39 = vpop.f32.mrb[30].mxu0 }
 0xb15   : > { %v2921_v40 = vpop.f32.mrb[31].mxu0  ;;  %v1865_v49 = vmul.f32 0.35355338, %v1858_v39  ;;  %v1872_v50 = vsel %vm1081_vm4, %v1864_v45, -inf }
 0xb16   : > { %v1804_v41 = vpop.f32.mrb[24].mxu1 }
 0xb17   : > { %v1862_v42 = vmul.f32 0.35355338, %v1804_v41  ;;  %v2914_v43 = vpop.f32.mrb[25].mxu1  ;;  %v1875_v51 = vsel %vm1081_vm4, %v1865_v49, -inf }
 0xb18   : > { %v1807_v44 = vpop.f32.mrb[26].mxu1 }
 0xb19   : > { %v1863_v2 = vmul.f32 0.35355338, %v1807_v44  ;;  %v2915_v46 = vpop.f32.mrb[27].mxu1  ;;  %v1866_v47 = vsel %vm1081_vm4, %v1862_v42, -inf }
 0xb1a   : > { %1867 = vmax.xlane.f32.xlu0 %v1866_v47 }
 0xb1b   : > { %v1869_v48 = vsel %vm1081_vm4, %v1863_v2, -inf }
 0xb1c   : > { %1870 = vmax.xlane.f32.xlu1 %v1869_v48 }
 0xb1e   : > { %1873 = vmax.xlane.f32.xlu0 %v1872_v50 }
 0xb22   : > { %1876 = vmax.xlane.f32.xlu0 %v1875_v51 }
 0xba7   : > { %v1868_v52 = vpop.xlane.xlu0 %1867 }
 0xba8   : > { %v1878_v53 = vsub.f32 %v1862_v42, %v1868_v52 }
 0xba9   : > { %v1871_v54 = vpop.xlane.xlu1 %1870 }
 0xbaa   : > { %v1882_v57 = vmul.f32 1.442695, %v1878_v53  ;;  %v1879_v58 = vsub.f32 %v1863_v2, %v1871_v54 }
 0xbab   : > { %v1874_v55 = vpop.xlane.xlu0 %1873 }
 0xbac   : > { %v1880_v56 = vsub.f32 %v1864_v45, %v1874_v55  ;;  %v1884_v62 = vmul.f32 1.442695, %v1879_v58 }
 0xbae   : > { %v1886_v59 = vmul.f32 1.442695, %v1880_v56 }
 0xbaf   : > { %v1877_v60 = vpop.xlane.xlu0 %1876 }
 0xbb0   : > { %3184 = vpow2.f32 %v1886_v59  ;;  %v1881_v61 = vsub.f32 %v1865_v49, %v1877_v60  ;;  %v3216_v59 = vld [vmem:[%s4139_s21] sm:$0xff] }
 0xbb1   : > { %3186 = vpow2.f32 %v1882_v57 }
 0xbb2   : > { %v1888_v63 = vmul.f32 1.442695, %v1881_v61 }
 0xbb4   : > { %3188 = vpow2.f32 %v1888_v63 }
 0xbb5   : > { %3190 = vpow2.f32 %v1884_v62  ;;  %v3217_v62 = vld [vmem:[%s4139_s21 + $0x10] sm:$0xff] }
 0xbba   : > { %v3185_v0 = vpop.eup %3184 }
 0xbbb   : > { %v1896_v1 = vsel %vm1081_vm4, %v3185_v0, 0.0  ;;  %v3187_v3 = vpop.eup %3186 }
 0xbbc   : > { %1897 = vadd.xlane.f32.xlu0 %v1896_v1  ;;  %v1890_v5 = vsel %vm1081_vm4, %v3187_v3, 0.0  ;;  %v3218_v1 = vld [vmem:[%s4139_s21 + $0x8] sm:$0xff] }
 0xbbe   : > { %v3189_v4 = vpop.eup %3188 }
 0xbbf   : > { %v1899_v6 = vsel %vm1081_vm4, %v3189_v4, 0.0  ;;  %v3191_v7 = vpop.eup %3190 }
 0xbc0   : > { %1891 = vadd.xlane.f32.xlu0 %v1890_v5  ;;  %1900 = vadd.xlane.f32.xlu1 %v1899_v6  ;;  %v1893_v8 = vsel %vm1081_vm4, %v3191_v7, 0.0  ;;  %v3219_v6 = vld [vmem:[%s4139_s21 + $0x18] sm:$0xff] }
 0xbc4   : > { %1894 = vadd.xlane.f32.xlu1 %v1893_v8 }
 0xbd5   : > { %1959 = vrot.lane.b32.xlu1 %v4180_v12, %s3622_s18 }
 0xbd6   : > { %1912 = vrot.lane.b32.xlu0 %v4182_v13, %s3622_s18 }
 0xbd9   : > { %1476 = vrot.lane.b32.xlu1 %v4278_v24, %s3623_s11 }
 0xbda   : > { %1480 = vrot.lane.b32.xlu0 %v4274_v20, %s3623_s11 }
 0xbdd   : > { %1478 = vrot.lane.b32.xlu1 %v4280_v26, %s3623_s11 }
 0xbde   : > { %1743 = vrot.lane.b32.xlu0 %v1685_v33, %s3624_s16  ;;  %v3120_v33 = vld [vmem:[%s4082_s28] sm:$0xff]   ;;  %s4591_s28 = scalar_lea.vmem [#allocation8], %s4072_s24 }
 0xbdf   : > { %v2748_v52 = vld [vmem:[%s4591_s28] ss:$0 sm:$0xff] }
 0xbe1   : > { %1482 = vrot.lane.b32.xlu1 %v4276_v22, %s3623_s11 }
 0xbe2   : > { %1747 = vrot.lane.b32.xlu0 %v4318_v29, %s3624_s16 }
 0xbe5   : > { %1745 = vrot.lane.b32.xlu1 %v1688_v35, %s3624_s16 }
 0xbe9   : > { %1749 = vrot.lane.b32.xlu1 %v4320_v31, %s3624_s16 }
 0xc49   : > { %v1898_v12 = vpop.xlane.xlu0 %1897 }
 0xc4a   : > { %3192 = vrcp.f32 %v1898_v12 }
 0xc4d   : > { %v1892_v13 = vpop.xlane.xlu0 %1891  ;;  %v1901_v24 = vpop.xlane.xlu1 %1900 }
 0xc4e   : > { %3194 = vrcp.f32 %v1901_v24 }
 0xc4f   : > { %3196 = vrcp.f32 %v1892_v13 }
 0xc51   : > { %v1913_v20 = vpop.permute.xlu0 %1912  ;;  %v1895_v9 = vpop.xlane.xlu1 %1894 }
 0xc52   : > { %3198 = vrcp.f32 %v1895_v9  ;;  %2923 = vmatpush3.bf16.msra.mxu1 %v1913_v20 }
 0xc53   : > { %2934 = vmatprep.subr.bf16.mxu1 %v3120_v33 }
 0xc54   : > { %v3193_v22 = vpop.eup %3192 }
 0xc55   : > { %v1481_v26 = vpop.permute.xlu0 %1480  ;;  %v1960_v10 = vpop.permute.xlu1 %1959  ;;  %v1908_v17 = vmul.f32 %v3193_v22, %v3185_v0 }
 0xc56   : > { %1491 = vst.msk [vmem:[#allocation2 + $0x10] sm:$0xff] %vm1488_vm5, %v1481_v26  ;;  %2929 = vmatpush3.bf16.msra.mxu0 %v1960_v10 }
 0xc58   : > { %v3195_v11 = vpop.eup %3194 }
 0xc59   : > { %v1744_v14 = vpop.permute.xlu0 %1743  ;;  %v1477_v15 = vpop.permute.xlu1 %1476  ;;  %v1909_v18 = vmul.f32 %v3195_v11, %v3189_v4 }
 0xc5a   : > { %v3197_v16 = vpop.eup %3196  ;;  %1489 = vst.msk [vmem:[#allocation2] sm:$0xff] %vm1488_vm5, %v1477_v15 }
 0xc5b   : > { %1756 = vst.msk [vmem:[#allocation2] sm:$0xff] %vm1755_vm6, %v1744_v14  ;;  %v1911_v21 = vpack.c.bf16 %v1909_v18, %v1908_v17  ;;  %v1906_v23 = vmul.f32 %v3197_v16, %v3187_v3 }
 0xc5c   : > { %v3199_v19 = vpop.eup %3198 }
 0xc5d   : > { %v1907_v25 = vmul.f32 %v3199_v19, %v3191_v7  ;;  %v1748_v27 = vpop.permute.xlu0 %1747  ;;  %v1479_v28 = vpop.permute.xlu1 %1478  ;;  %2931 = vmatmul.mubr.msk.bf16.vlgmr.msra.gmra.mrb[32].mxu0 %vm1081_vm4, %v1911_v21 }
 0xc5e   : > { %1758 = vst.msk [vmem:[#allocation2 + $0x10] sm:$0xff] %vm1755_vm6, %v1748_v27 }
 0xc5f   : > { %1490 = vst.msk [vmem:[#allocation2 + $0x8] sm:$0xff] %vm1488_vm5, %v1479_v28  ;;  %v1910_v29 = vpack.c.bf16 %v1907_v25, %v1906_v23 }
 0xc61   : > { %2925 = vmatmul.mubr.msk.bf16.vlgmr.msra.gmra.mrb[28].mxu1 %vm1081_vm4, %v1910_v29  ;;  %v1483_v30 = vpop.permute.xlu1 %1482 }
 0xc62   : > { %1492 = vst.msk [vmem:[#allocation2 + $0x18] sm:$0xff] %vm1488_vm5, %v1483_v30  ;;  %2935 = vmatpush3.bf16.msra.mxu1 %v3120_v33  ;;  %v3122_v30 = vld [vmem:[%s4095_s3] sm:$0xff]  }
 0xc63   : > { %2936 = vmatprep.subr.bf16.mxu1 %v3121_v34  ;;  %2942 = vmatprep.subr.bf16.mxu0 %v3122_v30 }
 0xc64   : > { %2943 = vmatpush3.bf16.msra.mxu0 %v3122_v30 }
 0xc65   : > { %v1746_v31 = vpop.permute.xlu1 %1745 }
 0xc66   : > { %1757 = vst.msk [vmem:[#allocation2 + $0x8] sm:$0xff] %vm1755_vm6, %v1746_v31  ;;  %2937 = vmatpush3.bf16.msra.mxu1 %v3121_v34  ;;  %v3123_v31 = vld [vmem:[%s4095_s3 + $0x8] sm:$0xff]   ;;  %s4592_s3 = scalar_lea.vmem [#allocation9], %s4072_s24 }
 0xc67   : > { %2944 = vmatprep.subr.bf16.mxu0 %v3123_v31 }
 0xc68   : > { %2945 = vmatpush3.bf16.msra.mxu0 %v3123_v31 }
 0xc69   : > { %v1750_v32 = vpop.permute.xlu1 %1749 }
 0xc6a   : > { %1759 = vst.msk [vmem:[#allocation2 + $0x18] sm:$0xff] %vm1755_vm6, %v1750_v32 }
 0xd30   : > { %v1999_v35 = vpop.f32.mrb[32].mxu0 }
 0xd31   : > { %v2932_v36 = vpop.f32.mrb[33].mxu0 }
 0xd32   : > { %v2002_v37 = vpop.f32.mrb[34].mxu0 }
 0xd33   : > { %v2933_v38 = vpop.f32.mrb[35].mxu0 }
 0xd34   : > { %v1952_v39 = vpop.f32.mrb[28].mxu1 }
 0xd35   : > { %2010 = vrot.lane.b32.xlu0 %v1952_v39, %s3625_s0  ;;  %v2926_v40 = vpop.f32.mrb[29].mxu1 }
 0xd36   : > { %v1955_v41 = vpop.f32.mrb[30].mxu1 }
 0xd37   : > { %2012 = vrot.lane.b32.xlu1 %v1955_v41, %s3625_s0  ;;  %v2927_v42 = vpop.f32.mrb[31].mxu1 }
 0xd39   : > { %2014 = vrot.lane.b32.xlu0 %v1999_v35, %s3625_s0 }
 0xd3b   : > { %2016 = vrot.lane.b32.xlu1 %v2002_v37, %s3625_s0 }
 0xda7   : > { %v2011_v43 = vpop.permute.xlu0 %2010 }
 0xda8   : > { %2023 = vst.msk [vmem:[#allocation2] sm:$0xff] %vm2022_vm7, %v2011_v43 }
 0xda9   : > { %v2013_v44 = vpop.permute.xlu1 %2012 }
 0xdaa   : > { %2024 = vst.msk [vmem:[#allocation2 + $0x8] sm:$0xff] %vm2022_vm7, %v2013_v44 }
 0xdab   : > { %v2015_v45 = vpop.permute.xlu0 %2014 }
 0xdac   : > { %2025 = vst.msk [vmem:[#allocation2 + $0x10] sm:$0xff] %vm2022_vm7, %v2015_v45  ;;  %v2753_v45 = vld [vmem:[%s4592_s3] ss:$0 sm:$0xff] }
 0xdad   : > { %v2017_v2 = vpop.permute.xlu1 %2016 }
 0xdae   : > { %2026 = vst.msk [vmem:[#allocation2 + $0x18] sm:$0xff] %vm2022_vm7, %v2017_v2 }
 0xdaf   : > { %v2027_v46 = vld [vmem:[#allocation2] sm:$0xff] }
 0xdb1   : > { %v2028_v47 = vld [vmem:[#allocation2 + $0x8] sm:$0xff] }
 0xdb2   : > { %v2031_v48 = vpack.c.bf16 %v2028_v47, %v2027_v46 }
 0xdb3   : > { %v2029_v49 = vld [vmem:[#allocation2 + $0x10] sm:$0xff] }
 0xdb4   : > { %2938 = vmatprep.mubr.msk.bf16.mxu1 %vm818_vm1, %v2031_v48 }
 0xdb5   : > { %v2030_v50 = vld [vmem:[#allocation2 + $0x18] sm:$0xff] }
 0xdb6   : > { %v2032_v51 = vpack.c.bf16 %v2030_v50, %v2029_v49  ;;  %v2754_v50 = vld [vmem:[%s4593_s20] ss:$0 sm:$0xff] }
 0xdb8   : > { %2939 = vmatmul.mubr.msk.bf16.vlgmr.msra.gmra.mrb[32].mxu1 %vm818_vm1, %v2032_v51 }
 0xe8b   : > { %v2940_v53 = vpop.f32.mrb[32].mxu1 }
 0xe8c   : > { %v2096_v54 = vpop.f32.mrb[33].mxu1  ;;  %v2105_v55 = vadd.f32 %v2940_v53, %v2748_v52 }
 0xe8d   : > { %v2097_v56 = vadd.f32 %v2748_v52, %v2096_v54  ;;  %v2941_v57 = vpop.f32.mrb[34].mxu1 }
 0xe8e   : > { %v2099_v58 = vpop.f32.mrb[35].mxu1  ;;  %v4362_v63 = vadd.f32 %v3217_v62, %v2105_v55  ;;  %v2108_v0 = vadd.f32 %v2941_v57, %v2748_v52 }
 0xe8f   : > { %v4359_v60 = vadd.f32 %v3216_v59, %v2097_v56  ;;  %v2100_v61 = vadd.f32 %v2748_v52, %v2099_v58 }
 0xe90   : > { %v4372_v7 = vadd.f32 %v3219_v6, %v2108_v0  ;;  %v2121_v8 = vsel %vm818_vm1, %v4362_v63, 0.0  ;;  %v3127_v6 = vld [vmem:[%s4137_s27 + $0x18] sm:$0xff]  }
 0xe91   : > { %v4365_v3 = vadd.f32 %v3218_v1, %v2100_v61  ;;  %v2115_v4 = vsel %vm818_vm1, %v4359_v60, 0.0  ;;  %v3124_v1 = vld [vmem:[%s4137_s27] sm:$0xff]  }
 0xe92   : > { %2116 = vadd.xlane.f32.xlu0 %v2115_v4  ;;  %v2124_v12 = vsel %vm818_vm1, %v4372_v7, 0.0  ;;  %v3125_v4 = vld [vmem:[%s4137_s27 + $0x8] sm:$0xff]   ;;  %2950 = vmatprep.subr.bf16.mxu1 %v3124_v1 }
 0xe93   : > { %v2118_v5 = vsel %vm818_vm1, %v4365_v3, 0.0  ;;  %2951 = vmatpush3.bf16.msra.mxu1 %v3124_v1 }
 0xe94   : > { %2119 = vadd.xlane.f32.xlu1 %v2118_v5  ;;  %2952 = vmatprep.subr.bf16.mxu1 %v3125_v4  ;;  %v3126_v5 = vld [vmem:[%s4137_s27 + $0x10] sm:$0xff]   ;;  %s4595_s27 = scalar_lea.vmem [#allocation15], %s4072_s24 }
 0xe96   : > { %2122 = vadd.xlane.f32.xlu0 %v2121_v8  ;;  %v2755_v8 = vld [vmem:[%s4594_s13] ss:$0 sm:$0xff] }
 0xe97   : > { %2953 = vmatpush3.bf16.msra.mxu1 %v3125_v4 }
 0xe98   : > { %2954 = vmatprep.subr.bf16.mxu1 %v3126_v5 }
 0xe9a   : > { %2125 = vadd.xlane.f32.xlu0 %v2124_v12 }
 0xe9b   : > { %2955 = vmatpush3.bf16.msra.mxu1 %v3126_v5 }
 0xe9c   : > { %2956 = vmatprep.subr.bf16.mxu1 %v3127_v6 }
 0xe9f   : > { %2957 = vmatpush3.bf16.msra.mxu1 %v3127_v6 }
 0xf1f   : > { %v2117_v13 = vpop.xlane.xlu0 %2116 }
 0xf20   : > { %v2127_v24 = vmul.f32 0.03125, %v2117_v13 }
 0xf21   : > { %v2120_v20 = vpop.xlane.xlu1 %2119 }
 0xf22   : > { %v2131_v9 = vsub.f32 %v4359_v60, %v2127_v24  ;;  %v2128_v26 = vmul.f32 0.03125, %v2120_v20 }
 0xf23   : > { %v2123_v10 = vpop.xlane.xlu0 %2122 }
 0xf24   : > { %v2132_v22 = vsub.f32 %v4365_v3, %v2128_v26  ;;  %v2129_v11 = vmul.f32 0.03125, %v2123_v10  ;;  %v2135_v14 = vmul.f32 %v2131_v9, %v2131_v9 }
 0xf26   : > { %v2133_v15 = vsub.f32 %v4362_v63, %v2129_v11  ;;  %v2139_v16 = vsel %vm818_vm1, %v2135_v14, 0.0  ;;  %v2136_v17 = vmul.f32 %v2132_v22, %v2132_v22 }
 0xf27   : > { %2140 = vadd.xlane.f32.xlu0 %v2139_v16  ;;  %v2126_v18 = vpop.xlane.xlu0 %2125 }
 0xf28   : > { %v2130_v19 = vmul.f32 0.03125, %v2126_v18  ;;  %v2142_v21 = vsel %vm818_vm1, %v2136_v17, 0.0  ;;  %v2137_v23 = vmul.f32 %v2133_v15, %v2133_v15 }
 0xf29   : > { %2143 = vadd.xlane.f32.xlu1 %v2142_v21 }
 0xf2a   : > { %v2134_v25 = vsub.f32 %v4372_v7, %v2130_v19  ;;  %v2145_v27 = vsel %vm818_vm1, %v2137_v23, 0.0 }
 0xf2b   : > { %2146 = vadd.xlane.f32.xlu0 %v2145_v27 }
 0xf2c   : > { %v2138_v28 = vmul.f32 %v2134_v25, %v2134_v25 }
 0xf2e   : > { %v2148_v29 = vsel %vm818_vm1, %v2138_v28, 0.0 }
 0xf2f   : > { %2149 = vadd.xlane.f32.xlu1 %v2148_v29 }
 0xfb4   : > { %v2141_v32 = vpop.xlane.xlu0 %2140 }
 0xfb5   : > { %v2151_v33 = vmul.f32 0.03125, %v2141_v32 }
 0xfb6   : > { %v2144_v34 = vpop.xlane.xlu1 %2143 }
 0xfb7   : > { %v2155_v35 = vadd.f32 1e-05, %v2151_v33  ;;  %v2152_v36 = vmul.f32 0.03125, %v2144_v34 }
 0xfb8   : > { %v2147_v37 = vpop.xlane.xlu0 %2146 }
 0xfb9   : > { %3200 = vrsqrt.f32 %v2155_v35  ;;  %v2156_v38 = vadd.f32 1e-05, %v2152_v36  ;;  %v2153_v39 = vmul.f32 0.03125, %v2147_v37 }
 0xfbb   : > { %3202 = vrsqrt.f32 %v2156_v38  ;;  %v2157_v40 = vadd.f32 1e-05, %v2153_v39 }
 0xfbc   : > { %v2150_v41 = vpop.xlane.xlu1 %2149 }
 0xfbd   : > { %3204 = vrsqrt.f32 %v2157_v40  ;;  %v2154_v42 = vmul.f32 0.03125, %v2150_v41 }
 0xfbf   : > { %v2158_v43 = vadd.f32 1e-05, %v2154_v42 }
 0xfc1   : > { %3206 = vrsqrt.f32 %v2158_v43 }
 0xfc3   : > { %v3201_v44 = vpop.eup %3200 }
 0xfc4   : > { %v2163_v2 = vmul.f32 %v3201_v44, %v2131_v9 }
 0xfc5   : > { %v3203_v46 = vpop.eup %3202 }
 0xfc6   : > { %v2164_v47 = vmul.f32 %v3203_v46, %v2132_v22  ;;  %v2174_v48 = vmul.f32 %v2753_v45, %v2163_v2 }
 0xfc7   : > { %v3205_v49 = vpop.eup %3204 }
 0xfc8   : > { %v2165_v51 = vmul.f32 %v3205_v49, %v2133_v15  ;;  %v2175_v52 = vmul.f32 %v2753_v45, %v2164_v47  ;;  %v2185_v53 = vadd.f32 %v2754_v50, %v2174_v48 }
 0xfca   : > { %v2186_v54 = vadd.f32 %v2754_v50, %v2175_v52  ;;  %v2176_v56 = vmul.f32 %v2753_v45, %v2165_v51 }
 0xfcb   : > { %v3207_v55 = vpop.eup %3206 }
 0xfcc   : > { %v2166_v57 = vmul.f32 %v3207_v55, %v2134_v25  ;;  %v2189_v58 = vpack.c.bf16 %v2186_v54, %v2185_v53  ;;  %v2187_v61 = vadd.f32 %v2754_v50, %v2176_v56  ;;  %v2760_v54 = vld [vmem:[%s4595_s27] ss:$0 sm:$0xff] }
 0xfce   : > { %v2177_v59 = vmul.f32 %v2753_v45, %v2166_v57  ;;  %2946 = vmatprep.mubr.msk.bf16.mxu0 %vm818_vm1, %v2189_v58 }
 0xfd0   : > { %v2188_v62 = vadd.f32 %v2754_v50, %v2177_v59 }
 0xfd2   : > { %v2190_v0 = vpack.c.bf16 %v2188_v62, %v2187_v61 }
 0xfd4   : > { %2947 = vmatmul.mubr.msk.bf16.vlgmr.msra.gmra.mrb[36].mxu0 %vm818_vm1, %v2190_v0 }
0x10a7   : > { %v2948_v12 = vpop.f32.mrb[36].mxu0 }
0x10a8   : > { %v2263_v13 = vadd.f32 %v2948_v12, %v2755_v8  ;;  %v2254_v24 = vpop.f32.mrb[37].mxu0 }
0x10a9   : > { %v2255_v20 = vadd.f32 %v2755_v8, %v2254_v24  ;;  %v2949_v9 = vpop.f32.mrb[38].mxu0 }
0x10aa   : > { %v2275_v26 = vmul.f32 0.044715, %v2263_v13  ;;  %v2266_v10 = vadd.f32 %v2949_v9, %v2755_v8  ;;  %v2257_v22 = vpop.f32.mrb[39].mxu0  ;;  %v2271_v43 = vmul.f32 0.5, %v2263_v13 }
0x10ab   : > { %v2273_v11 = vmul.f32 0.044715, %v2255_v20  ;;  %v2258_v14 = vadd.f32 %v2755_v8, %v2257_v22  ;;  %v2269_v2 = vmul.f32 0.5, %v2255_v20 }
0x10ac   : > { %v2279_v15 = vmul.f32 %v2275_v26, %v2263_v13  ;;  %v2276_v16 = vmul.f32 0.044715, %v2266_v10  ;;  %v2272_v44 = vmul.f32 0.5, %v2266_v10 }
0x10ad   : > { %v2277_v17 = vmul.f32 %v2273_v11, %v2255_v20  ;;  %v2274_v18 = vmul.f32 0.044715, %v2258_v14  ;;  %v2270_v46 = vmul.f32 0.5, %v2258_v14 }
0x10ae   : > { %v2283_v19 = vmul.f32 %v2279_v15, %v2263_v13  ;;  %v2280_v21 = vmul.f32 %v2276_v16, %v2266_v10 }
0x10af   : > { %v2281_v23 = vmul.f32 %v2277_v17, %v2255_v20  ;;  %v2278_v25 = vmul.f32 %v2274_v18, %v2258_v14 }
0x10b0   : > { %v2287_v27 = vadd.f32 %v2283_v19, %v2263_v13  ;;  %v2284_v28 = vmul.f32 %v2280_v21, %v2266_v10 }
0x10b1   : > { %v2285_v29 = vadd.f32 %v2281_v23, %v2255_v20  ;;  %v2282_v30 = vmul.f32 %v2278_v25, %v2258_v14 }
0x10b2   : > { %v2291_v31 = vmul.f32 0.7978846, %v2287_v27  ;;  %v2288_v32 = vadd.f32 %v2284_v28, %v2266_v10 }
0x10b3   : > { %v2289_v33 = vmul.f32 0.7978846, %v2285_v29  ;;  %v2286_v34 = vadd.f32 %v2282_v30, %v2258_v14 }
0x10b4   : > { %3208 = vtanh.f32 %v2291_v31  ;;  %v2292_v35 = vmul.f32 0.7978846, %v2288_v32 }
0x10b5   : > { %3210 = vtanh.f32 %v2289_v33  ;;  %v2290_v36 = vmul.f32 0.7978846, %v2286_v34 }
0x10b6   : > { %3212 = vtanh.f32 %v2292_v35 }
0x10b7   : > { %3214 = vtanh.f32 %v2290_v36 }
0x10be   : > { %v3209_v37 = vpop.eup %3208 }
0x10bf   : > { %v3211_v38 = vpop.eup %3210  ;;  %v2299_v39 = vadd.f32 1.0, %v3209_v37 }
0x10c0   : > { %v3213_v40 = vpop.eup %3212  ;;  %v2297_v41 = vadd.f32 1.0, %v3211_v38 }
0x10c1   : > { %v3215_v42 = vpop.eup %3214  ;;  %v2300_v45 = vadd.f32 1.0, %v3213_v40  ;;  %v2303_v48 = vmul.f32 %v2299_v39, %v2271_v43 }
0x10c2   : > { %v2298_v47 = vadd.f32 1.0, %v3215_v42  ;;  %v2301_v50 = vmul.f32 %v2297_v41, %v2269_v2 }
0x10c3   : > { %v2304_v49 = vmul.f32 %v2300_v45, %v2272_v44 }
0x10c4   : > { %v2302_v51 = vmul.f32 %v2298_v47, %v2270_v46 }
0x10c5   : > { %v2306_v52 = vpack.c.bf16 %v2304_v49, %v2303_v48 }
0x10c6   : > { %v2305_v53 = vpack.c.bf16 %v2302_v51, %v2301_v50 }
0x10c8   : > { %2958 = vmatprep.mubr.msk.bf16.mxu1 %vm2346_vm8, %v2305_v53 }
0x10c9   : > { %2959 = vmatmul.mubr.msk.bf16.vlgmr.msra.gmra.mrb[36].mxu1 %vm2346_vm8, %v2306_v52 }
0x119c   : > { %v2960_v55 = vpop.f32.mrb[36].mxu1 }
0x119d   : > { %v2396_v56 = vadd.f32 %v2960_v55, %v2760_v54  ;;  %v2387_v57 = vpop.f32.mrb[37].mxu1 }
0x119e   : > { %v2388_v58 = vadd.f32 %v2760_v54, %v2387_v57  ;;  %v2961_v59 = vpop.f32.mrb[38].mxu1 }
0x119f   : > { %v2404_v61 = vadd.f32 %v2396_v56, %v4362_v63  ;;  %v2399_v62 = vadd.f32 %v2961_v59, %v2760_v54  ;;  %v2390_v0 = vpop.f32.mrb[39].mxu1 }
0x11a0   : > { %v2402_v1 = vadd.f32 %v2388_v58, %v4359_v60  ;;  %v2391_v4 = vadd.f32 %v2760_v54, %v2390_v0 }
0x11a1   : > { %2408 = vst.msk [vmem:[%s4139_s21 + $0x10] sm:$0xff] %vm818_vm1, %v2404_v61  ;;  %v2405_v5 = vadd.f32 %v2399_v62, %v4372_v7 }
0x11a2   : > { %2406 = vst.msk [vmem:[%s4139_s21] sm:$0xff] %vm818_vm1, %v2402_v1  ;;  %v2403_v63 = vadd.f32 %v2391_v4, %v4365_v3 }
0x11a3   : > { %2409 = vst.msk [vmem:[%s4139_s21 + $0x18] sm:$0xff] %vm818_vm1, %v2405_v5 }
0x11a4   : > { %2407 = vst.msk [vmem:[%s4139_s21 + $0x8] sm:$0xff] %vm818_vm1, %v2403_v63 }
0x11a5   : > { %3473 = shalt.err (!%p3470_p3)
}
0x11a6   : > { %s3474_s21 = scalar_lea.hbm %s4412_s25, 512  ;;  %s3478_s7 = scalar_lea.hbm %s4598_s1, 1024 }
0x11a7   : > { %p3475_p11 = scmp.ne.s32.totalorder %s4412_s25, %s3474_s21  ;;  %p3479_p10 = scmp.lt.u32.totalorder %s4412_s25, %s4598_s1 }
0x11a8   : > { %p3480_p0 = scmp.lt.u32.totalorder %s3478_s7, %s3474_s21  ;;  %p3482_p9 = scmp.lt.u32.totalorder %s3474_s21, %s4412_s25 }
0x11a9   : > { %p3476_p12 = pnand %p3475_p11, %p4600_p5 }
0x11aa   : > { %p3481_p1 = por %p3480_p0, %p3479_p10 }
0x11ab   : > { %p3477_p6 = pneg %p3476_p12 }
0x11ac   : > { %p3483_p2 = por %p3482_p9, %p3481_p1 }
0x11ae   : > { %p3484_p4 = pnand %p3483_p2, %p3477_p6 }
0x11b0   : > { %3487 = shalt.err (!%p3484_p4)
}
0x11b1   : > { %s3627_s18 = smov 128  }
0x11b2   : > { %2978 = dma.vmem_to_hbm [thread:$0]  (%p4600_p5), %s4417_s10, 512, %s4412_s25, %s4425_s22, %s3627_s18, %s3627_s18, %s3623_s11  }
0x11b3 PF: > { %s4601_s16 = sld [smem:[#allocation29_spill]]  ;;  %s4602_s0 = sld [smem:[#allocation24_spill]] }
0x11b4   : > { %s4603_s28 = sld [smem:[#allocation35_spill]] }
0x11b9   : > { %p3010_p8 = scmp.ge.s32.totalorder %s4601_s16, 2  ;;  %s2440_s3 = sand.u32 1, %s4602_s0  }
0x11ba   : > { %p4604_p7 = scmp.ne.s32.totalorder %s4603_s28, 0  ;;  %s2441_s20 = scalar_lea.sflag [#allocation5], %s2440_s3 }
0x11bc   : > { %p3006_p13 = pnand %p3010_p8, %p4604_p7 }
0x11be   : > { %3553 = dma.done.wait (!%p3006_p13), %s2441_s20, 512  }
0x11bf   : > { %3555 = vsyncadd (!%p3006_p13), %s2441_s20, 4294966784  ;;  %s41_s18 = sadd.s32 1, %s4601_s16   ;;  %s4605_s13 = sld [smem:[#allocation25_spill]] }
0x11c0   : > { %p38_p3 = scmp.ge.s32.totalorder %s41_s18, 6   ;;  %s4606_s27 = sld [smem:[#allocation33_spill]] }
0x11c1   : > { %s4607_s6 = sld [smem:[#allocation26_spill]]  ;;  %s4608_s30 = sld [smem:[#allocation32_spill]] }
0x11c2   : > { %s4609_s14 = sld [smem:[#allocation27_spill]]  ;;  %s4610_s15 = sld [smem:[#allocation28_spill]] }
0x11c3   : > { %s4611_s16 = sld [smem:[#allocation30_spill]]  ;;  %s4612_s17 = sld [smem:[#allocation31_spill]] }
0x11c4   : > { %s4613_s25 = smov %s3562_s26  ;;  %s4615_s28 = smov %s3574_s29 }
0x11c5   : > { %s4614_s26 = smov %s4605_s13  ;;  %40 = sbr.rel (!%p38_p3) target bundleno = 32 (0x20), region = 221 }
0x11c7   : > { %s4616_s29 = smov %s4607_s6 }
0x11cc   :  { %2446 = vsyncpa [#allocation4], 1 }
0x11cd   :  { %2448 = vsyncpa [#allocation4 + $0x1], 1 }
0x11ce   :  { %2449 = vsyncpa [#allocation7], 1 }
0x11cf   :  { %2451 = vsyncpa [#allocation7 + $0x1], 1 }
0x11d0   :  { %2452 = vsyncpa [#allocation10], 1 }
0x11d1   :  { %2454 = vsyncpa [#allocation10 + $0x1], 1 }
0x11d2   :  { %2455 = vsyncpa [#allocation13], 1 }
0x11d3   :  { %2457 = vsyncpa [#allocation13 + $0x1], 1 }
0x11d4   :  { %2458 = vsyncpa [#allocation16], 1 }
0x11d5   :  { %2460 = vsyncpa [#allocation16 + $0x1], 1 }
0x11d6   :  { %2461 = vsyncpa [#allocation5], 1 }
0x11d7   :  { %2463 = vsyncpa [#allocation5 + $0x1], 1 }

</bundles_post_ra>
